<compile_context>
chip_gen: v7x
topology: tpu7x:2x2x1
jax: 0.10.0
libtpu: 0.0.40
codegen_flags: <defaults>
</compile_context>

<pallas_src>
import functools

import jax
import jax.numpy as jnp
from jax import lax
from jax.experimental import pallas as pl
from jax.experimental.pallas import tpu as pltpu


def _self_attention_kernel(x_ref, gamma_ref, beta_ref, wqkv_ref, bqkv_ref,
                           wout_ref, bout_ref, o_ref, *, n_head, eps):
    # x_ref: (C, L)   gamma/beta: (C, 1)   wqkv: (3C, C)   bqkv: (3C, 1)
    # wout: (C, C)    bout: (C, 1)         o_ref: (C, L)
    x = x_ref[...].astype(jnp.float32)
    C, L = x.shape
    d = C // n_head

    # --- GroupNorm(num_groups=1): normalize over all C*L elements of the sample.
    inv_n = 1.0 / (C * L)
    mean = jnp.sum(x) * inv_n
    xc = x - mean
    var = jnp.sum(xc * xc) * inv_n
    xn = xc * lax.rsqrt(var + eps)
    xn = xn * gamma_ref[...].astype(jnp.float32) + beta_ref[...].astype(jnp.float32)

    # --- qkv 1x1 conv:  (3C, C) @ (C, L) + b  ->  (3C, L)
    qkv = jnp.dot(wqkv_ref[...].astype(jnp.float32), xn,
                  preferred_element_type=jnp.float32)
    qkv = qkv + bqkv_ref[...].astype(jnp.float32)

    # --- multi-head attention (static Python loop over heads).
    scale = float(d) ** (-0.25)
    y_heads = []
    for h in range(n_head):
        q = qkv[h * d:(h + 1) * d, :] * scale              # (d, L)
        k = qkv[C + h * d:C + (h + 1) * d, :] * scale      # (d, L)
        v = qkv[2 * C + h * d:2 * C + (h + 1) * d, :]      # (d, L)
        # logits[qpos, kpos] = sum_d q[d, qpos] * k[d, kpos]      (== q^T @ k)
        logits = lax.dot_general(q, k, (((0,), (0,)), ((), ())),
                                 preferred_element_type=jnp.float32)   # (L, L)
        m = jnp.max(logits, axis=-1, keepdims=True)
        p = jnp.exp(logits - m)
        att = p / jnp.sum(p, axis=-1, keepdims=True)
        # yh[d, qpos] = sum_k v[d, k] * att[qpos, k]              (== (att @ v)^T)
        yh = lax.dot_general(v, att, (((1,), (1,)), ((), ())),
                             preferred_element_type=jnp.float32)       # (d, L)
        y_heads.append(yh)
    y = y_heads[0] if n_head == 1 else jnp.concatenate(y_heads, axis=0)  # (C, L)

    # --- output 1x1 conv + residual add.
    # TODO(synk): nn.Dropout2d is identity at inference; training-mode channel
    #             dropout (random channel zeroing) is not implemented.
    out = jnp.dot(wout_ref[...].astype(jnp.float32), y,
                  preferred_element_type=jnp.float32)
    out = out + bout_ref[...].astype(jnp.float32)
    o_ref[...] = (x + out).astype(o_ref.dtype)


def self_attention_2d(x, params, *, n_head=1, eps=1e-5):
    """Forward pass of SelfAttention2d for an NCHW tensor (inference semantics)."""
    N, C, H, W = x.shape
    assert C % n_head == 0
    L = H * W

    x2 = x.reshape(N, C, L)                      # lane-dense last dim (L >= 128)
    gamma = params["gamma"].reshape(C, 1)
    beta = params["beta"].reshape(C, 1)
    wqkv = params["wqkv"].reshape(3 * C, C)
    bqkv = params["bqkv"].reshape(3 * C, 1)
    wout = params["wout"].reshape(C, C)
    bout = params["bout"].reshape(C, 1)

    const = lambda n: (0, 0)                     # weights: same block every step
    out = pl.pallas_call(
        functools.partial(_self_attention_kernel, n_head=n_head, eps=eps),
        out_shape=jax.ShapeDtypeStruct((N, C, L), x.dtype),
        grid_spec=pltpu.PrefetchScalarGridSpec(
            num_scalar_prefetch=0,
            grid=(N,),
            in_specs=[
                pl.BlockSpec((None, C, L), lambda n: (n, 0, 0)),
                pl.BlockSpec((C, 1), const),
                pl.BlockSpec((C, 1), const),
                pl.BlockSpec((3 * C, C), const),
                pl.BlockSpec((3 * C, 1), const),
                pl.BlockSpec((C, C), const),
                pl.BlockSpec((C, 1), const),
            ],
            out_specs=pl.BlockSpec((None, C, L), lambda n: (n, 0, 0)),
        ),
        compiler_params=pltpu.CompilerParams(
            dimension_semantics=("parallel",)),
    )(x2, gamma, beta, wqkv, bqkv, wout, bout)
    return out.reshape(N, C, H, W)


def _reference_forward(x, params, *, n_head, eps=1e-5):
    """Pure-JAX reference replicating the PyTorch forward math."""
    N, C, H, W = x.shape
    L = H * W
    d = C // n_head
    hp = lax.Precision.HIGHEST

    xr = x.reshape(N, -1)
    mean = jnp.mean(xr, axis=1, keepdims=True)
    var = jnp.mean((xr - mean) ** 2, axis=1, keepdims=True)
    xn = ((xr - mean) / jnp.sqrt(var + eps)).reshape(N, C, H, W)
    xn = xn * params["gamma"].reshape(1, C, 1, 1) + params["beta"].reshape(1, C, 1, 1)

    qkv = jnp.einsum("oc,nchw->nohw", params["wqkv"], xn, precision=hp)
    qkv = qkv + params["bqkv"].reshape(1, 3 * C, 1, 1)
    qkv = jnp.swapaxes(qkv.reshape(N, 3 * n_head, d, L), 2, 3)   # (N, 3H, L, d)
    q, k, v = jnp.split(qkv, 3, axis=1)
    scale = d ** (-0.25)
    att = jnp.einsum("nhqd,nhkd->nhqk", q * scale, k * scale, precision=hp)
    att = jax.nn.softmax(att, axis=-1)
    y = jnp.einsum("nhqk,nhkd->nhqd", att, v, precision=hp)
    y = jnp.swapaxes(y, 2, 3).reshape(N, C, H, W)
    out = jnp.einsum("oc,nchw->nohw", params["wout"], y, precision=hp)
    out = out + params["bout"].reshape(1, C, 1, 1)
    return x + out


if __name__ == "__main__":
    key = jax.random.PRNGKey(0)
    N, C, H, W = 2, 4, 16, 16
    n_head = 1                                   # module default

    ks = jax.random.split(key, 7)
    x = jax.random.normal(ks[0], (N, C, H, W), dtype=jnp.float32)
    params = {
        "gamma": 1.0 + 0.1 * jax.random.normal(ks[1], (C,), jnp.float32),
        "beta": 0.1 * jax.random.normal(ks[2], (C,), jnp.float32),
        "wqkv": jax.random.normal(ks[3], (3 * C, C), jnp.float32) / (C ** 0.5),
        "bqkv": 0.02 * jax.random.normal(ks[4], (3 * C,), jnp.float32),
        "wout": jax.random.normal(ks[5], (C, C), jnp.float32) / (C ** 0.5),
        "bout": 0.02 * jax.random.normal(ks[6], (C,), jnp.float32),
    }

    out = self_attention_2d(x, params, n_head=n_head)
    out = jax.block_until_ready(out)

    ref = _reference_forward(x, params, n_head=n_head)
    assert out.shape == x.shape, out.shape
    assert out.dtype == x.dtype, out.dtype
    max_err = float(jnp.max(jnp.abs(out - ref)))
    assert max_err < 2e-2, f"mismatch vs reference, max abs err = {max_err}"

    print("KERNEL_OK")
</pallas_src>

<mosaic_0001>
module attributes {stable_mosaic.version = 11 : i64} {
  func.func @_self_attention_kernel(%arg0: i32, %arg1: memref<1x4x256xf32, #tpu.memory_space<vmem>>, %arg2: memref<4x1xf32, #tpu.memory_space<vmem>>, %arg3: memref<4x1xf32, #tpu.memory_space<vmem>>, %arg4: memref<12x4xf32, #tpu.memory_space<vmem>>, %arg5: memref<12x1xf32, #tpu.memory_space<vmem>>, %arg6: memref<4x4xf32, #tpu.memory_space<vmem>>, %arg7: memref<4x1xf32, #tpu.memory_space<vmem>>, %arg8: memref<1x4x256xf32, #tpu.memory_space<vmem>>) attributes {dimension_semantics = [#tpu.dimension_semantics<parallel>], iteration_bounds = array<i64: 2>, scalar_prefetch = 0 : i64, scratch_operands = 0 : i64, tpu.core_type = #tpu.core_type<tc>, window_params = [{transform_indices = @transform_0, window_bounds = array<i64: 1, 4, 256>}, {pipeline_mode = #tpu.pipeline_mode<synchronous>, transform_indices = @transform_1, window_bounds = array<i64: 4, 1>}, {pipeline_mode = #tpu.pipeline_mode<synchronous>, transform_indices = @transform_2, window_bounds = array<i64: 4, 1>}, {pipeline_mode = #tpu.pipeline_mode<synchronous>, transform_indices = @transform_3, window_bounds = array<i64: 12, 4>}, {pipeline_mode = #tpu.pipeline_mode<synchronous>, transform_indices = @transform_4, window_bounds = array<i64: 12, 1>}, {pipeline_mode = #tpu.pipeline_mode<synchronous>, transform_indices = @transform_5, window_bounds = array<i64: 4, 4>}, {pipeline_mode = #tpu.pipeline_mode<synchronous>, transform_indices = @transform_6, window_bounds = array<i64: 4, 1>}, {transform_indices = @transform_7, window_bounds = array<i64: 1, 4, 256>}]} {
    %c0 = arith.constant 0 : index
    %c0_0 = arith.constant 0 : index
    %c0_1 = arith.constant 0 : index
    %0 = vector.load %arg1[%c0, %c0_0, %c0_1] : memref<1x4x256xf32, #tpu.memory_space<vmem>>, vector<1x4x256xf32>
    %1 = vector.shape_cast %0 : vector<1x4x256xf32> to vector<4x256xf32>
    %2 = vector.shape_cast %1 : vector<4x256xf32> to vector<1x4x256xf32>
    %cst = arith.constant dense<0.000000e+00> : vector<1xf32>
    %3 = vector.multi_reduction <add>, %2, %cst [1, 2] : vector<1x4x256xf32> to vector<1xf32>
    %4 = vector.shape_cast %3 : vector<1xf32> to vector<1x1x1xf32>
    %5 = vector.extract %4[0, 0, 0] : f32 from vector<1x1x1xf32>
    %cst_2 = arith.constant 9.765625E-4 : f32
    %6 = arith.mulf %5, %cst_2 : f32
    %7 = vector.broadcast %6 : f32 to vector<4x256xf32>
    %8 = arith.subf %1, %7 : vector<4x256xf32>
    %9 = arith.mulf %8, %8 : vector<4x256xf32>
    %10 = vector.shape_cast %9 : vector<4x256xf32> to vector<1x4x256xf32>
    %cst_3 = arith.constant dense<0.000000e+00> : vector<1xf32>
    %11 = vector.multi_reduction <add>, %10, %cst_3 [1, 2] : vector<1x4x256xf32> to vector<1xf32>
    %12 = vector.shape_cast %11 : vector<1xf32> to vector<1x1x1xf32>
    %13 = vector.extract %12[0, 0, 0] : f32 from vector<1x1x1xf32>
    %cst_4 = arith.constant 9.765625E-4 : f32
    %14 = arith.mulf %13, %cst_4 : f32
    %cst_5 = arith.constant 9.99999974E-6 : f32
    %15 = arith.addf %14, %cst_5 : f32
    %16 = math.rsqrt %15 : f32
    %17 = vector.broadcast %16 : f32 to vector<4x256xf32>
    %18 = arith.mulf %8, %17 : vector<4x256xf32>
    %c0_6 = arith.constant 0 : index
    %c0_7 = arith.constant 0 : index
    %19 = vector.load %arg2[%c0_6, %c0_7] : memref<4x1xf32, #tpu.memory_space<vmem>>, vector<4x1xf32>
    %20 = vector.broadcast %19 : vector<4x1xf32> to vector<4x256xf32>
    %21 = arith.mulf %18, %20 : vector<4x256xf32>
    %c0_8 = arith.constant 0 : index
    %c0_9 = arith.constant 0 : index
    %22 = vector.load %arg3[%c0_8, %c0_9] : memref<4x1xf32, #tpu.memory_space<vmem>>, vector<4x1xf32>
    %23 = vector.broadcast %22 : vector<4x1xf32> to vector<4x256xf32>
    %24 = arith.addf %21, %23 : vector<4x256xf32>
    %c0_10 = arith.constant 0 : index
    %c0_11 = arith.constant 0 : index
    %25 = vector.load %arg4[%c0_10, %c0_11] : memref<12x4xf32, #tpu.memory_space<vmem>>, vector<12x4xf32>
    %cst_12 = arith.constant dense<0.000000e+00> : vector<12x256xf32>
    %26 = tpu.matmul %25, %24, %cst_12 {dimension_numbers = #tpu.dot_dimension_numbers<[1], [0], [0], [1], [0, 0, 1, 1], [], []>} : vector<12x4xf32>, vector<4x256xf32>, vector<12x256xf32> -> vector<12x256xf32>
    %c0_13 = arith.constant 0 : index
    %c0_14 = arith.constant 0 : index
    %27 = vector.load %arg5[%c0_13, %c0_14] : memref<12x1xf32, #tpu.memory_space<vmem>>, vector<12x1xf32>
    %28 = vector.broadcast %27 : vector<12x1xf32> to vector<12x256xf32>
    %29 = arith.addf %26, %28 : vector<12x256xf32>
    %30 = vector.extract_strided_slice %29 {offsets = [0, 0], sizes = [4, 256], strides = [1, 1]} : vector<12x256xf32> to vector<4x256xf32>
    %cst_15 = arith.constant 0.707106769 : f32
    %31 = vector.broadcast %cst_15 : f32 to vector<4x256xf32>
    %32 = arith.mulf %30, %31 : vector<4x256xf32>
    %33 = vector.extract_strided_slice %29 {offsets = [4, 0], sizes = [4, 256], strides = [1, 1]} : vector<12x256xf32> to vector<4x256xf32>
    %cst_16 = arith.constant 0.707106769 : f32
    %34 = vector.broadcast %cst_16 : f32 to vector<4x256xf32>
    %35 = arith.mulf %33, %34 : vector<4x256xf32>
    %36 = vector.extract_strided_slice %29 {offsets = [8, 0], sizes = [4, 256], strides = [1, 1]} : vector<12x256xf32> to vector<4x256xf32>
    %cst_17 = arith.constant dense<0.000000e+00> : vector<256x256xf32>
    %37 = tpu.matmul %32, %35, %cst_17 {dimension_numbers = #tpu.dot_dimension_numbers<[0], [0], [1], [1], [0, 1, 1, 1], [], []>} : vector<4x256xf32>, vector<4x256xf32>, vector<256x256xf32> -> vector<256x256xf32>
    %cst_18 = arith.constant dense<0xFF800000> : vector<256xf32>
    %38 = vector.multi_reduction <maximumf>, %37, %cst_18 [1] : vector<256x256xf32> to vector<256xf32>
    %39 = vector.shape_cast %38 : vector<256xf32> to vector<256x1xf32>
    %40 = vector.broadcast %39 : vector<256x1xf32> to vector<256x256xf32>
    %41 = arith.subf %37, %40 : vector<256x256xf32>
    %42 = math.exp %41 : vector<256x256xf32>
    %cst_19 = arith.constant dense<0.000000e+00> : vector<256xf32>
    %43 = vector.multi_reduction <add>, %42, %cst_19 [1] : vector<256x256xf32> to vector<256xf32>
    %44 = vector.shape_cast %43 : vector<256xf32> to vector<256x1xf32>
    %45 = vector.broadcast %44 : vector<256x1xf32> to vector<256x256xf32>
    %46 = arith.divf %42, %45 : vector<256x256xf32>
    %cst_20 = arith.constant dense<0.000000e+00> : vector<4x256xf32>
    %47 = tpu.matmul %36, %46, %cst_20 {dimension_numbers = #tpu.dot_dimension_numbers<[1], [1], [0], [0], [0, 0, 1, 0], [], []>} : vector<4x256xf32>, vector<256x256xf32>, vector<4x256xf32> -> vector<4x256xf32>
    %c0_21 = arith.constant 0 : index
    %c0_22 = arith.constant 0 : index
    %48 = vector.load %arg6[%c0_21, %c0_22] : memref<4x4xf32, #tpu.memory_space<vmem>>, vector<4x4xf32>
    %cst_23 = arith.constant dense<0.000000e+00> : vector<4x256xf32>
    %49 = tpu.matmul %48, %47, %cst_23 {dimension_numbers = #tpu.dot_dimension_numbers<[1], [0], [0], [1], [0, 0, 1, 1], [], []>} : vector<4x4xf32>, vector<4x256xf32>, vector<4x256xf32> -> vector<4x256xf32>
    %c0_24 = arith.constant 0 : index
    %c0_25 = arith.constant 0 : index
    %50 = vector.load %arg7[%c0_24, %c0_25] : memref<4x1xf32, #tpu.memory_space<vmem>>, vector<4x1xf32>
    %51 = vector.broadcast %50 : vector<4x1xf32> to vector<4x256xf32>
    %52 = arith.addf %49, %51 : vector<4x256xf32>
    %53 = arith.addf %1, %52 : vector<4x256xf32>
    %c0_26 = arith.constant 0 : index
    %c0_27 = arith.constant 0 : index
    %c0_28 = arith.constant 0 : index
    %54 = vector.load %arg8[%c0_26, %c0_27, %c0_28] : memref<1x4x256xf32, #tpu.memory_space<vmem>>, vector<1x4x256xf32>
    %55 = vector.shape_cast %54 : vector<1x4x256xf32> to vector<4x256xf32>
    %56 = vector.shape_cast %53 : vector<4x256xf32> to vector<1x4x256xf32>
    tpu.vector_store %arg8[%c0_26, %c0_27, %c0_28], %56 {strides = array<i32>} : memref<1x4x256xf32, #tpu.memory_space<vmem>>, vector<1x4x256xf32>,
    return
  }
  func.func @transform_0(%arg0: i32) -> (i32, i32, i32) {
    %c0_i32 = arith.constant 0 : i32
    %c0_i32_0 = arith.constant 0 : i32
    %c0_i32_1 = arith.constant 0 : i32
    return %arg0, %c0_i32, %c0_i32_0 : i32, i32, i32
  }
  func.func @transform_1(%arg0: i32) -> (i32, i32) {
    %c0_i32 = arith.constant 0 : i32
    %c0_i32_0 = arith.constant 0 : i32
    %c0_i32_1 = arith.constant 0 : i32
    return %c0_i32, %c0_i32_0 : i32, i32
  }
  func.func @transform_2(%arg0: i32) -> (i32, i32) {
    %c0_i32 = arith.constant 0 : i32
    %c0_i32_0 = arith.constant 0 : i32
    %c0_i32_1 = arith.constant 0 : i32
    return %c0_i32, %c0_i32_0 : i32, i32
  }
  func.func @transform_3(%arg0: i32) -> (i32, i32) {
    %c0_i32 = arith.constant 0 : i32
    %c0_i32_0 = arith.constant 0 : i32
    %c0_i32_1 = arith.constant 0 : i32
    return %c0_i32, %c0_i32_0 : i32, i32
  }
  func.func @transform_4(%arg0: i32) -> (i32, i32) {
    %c0_i32 = arith.constant 0 : i32
    %c0_i32_0 = arith.constant 0 : i32
    %c0_i32_1 = arith.constant 0 : i32
    return %c0_i32, %c0_i32_0 : i32, i32
  }
  func.func @transform_5(%arg0: i32) -> (i32, i32) {
    %c0_i32 = arith.constant 0 : i32
    %c0_i32_0 = arith.constant 0 : i32
    %c0_i32_1 = arith.constant 0 : i32
    return %c0_i32, %c0_i32_0 : i32, i32
  }
  func.func @transform_6(%arg0: i32) -> (i32, i32) {
    %c0_i32 = arith.constant 0 : i32
    %c0_i32_0 = arith.constant 0 : i32
    %c0_i32_1 = arith.constant 0 : i32
    return %c0_i32, %c0_i32_0 : i32, i32
  }
  func.func @transform_7(%arg0: i32) -> (i32, i32, i32) {
    %c0_i32 = arith.constant 0 : i32
    %c0_i32_0 = arith.constant 0 : i32
    %c0_i32_1 = arith.constant 0 : i32
    return %arg0, %c0_i32, %c0_i32_0 : i32, i32, i32
  }
}

</mosaic_0001>

<bundles_post_ra>
// kernel: tpu_custom_call.1
= control target key start
LH: loop header
LB: loop body
LE: loop exit
PB: predicated region body
PF: predicated region fallthrough
CT: control target
= control target key end

     0   :  { %12 = vsyncpa [#allocation3], 0  ;;  %s2805_s0 = inlined_call_operand.vmem [shape: f32[2,4,256], index: 0, kind: input, shape index: {}]   ;;  %s2806_s1 = inlined_call_operand.vmem [shape: f32[4,1], index: 1, kind: input, shape index: {}]   ;;  %s2807_s2 = inlined_call_operand.vmem [shape: f32[4,1], index: 2, kind: input, shape index: {}]   ;;  %s2808_s3 = inlined_call_operand.vmem [shape: f32[12,4], index: 3, kind: input, shape index: {}]   ;;  %s2809_s4 = inlined_call_operand.vmem [shape: f32[12,1], index: 4, kind: input, shape index: {}]   ;;  %s2810_s5 = inlined_call_operand.vmem [shape: f32[4,4], index: 5, kind: input, shape index: {}]   ;;  %s2811_s6 = inlined_call_operand.vmem [shape: f32[4,1], index: 6, kind: input, shape index: {}]   ;;  %s2812_s7 = inlined_call_operand.hbm [shape: f32[2,4,256], index: 7, kind: output, shape index: {}]  }
   0x1   :  { %14 = vsyncpa [#allocation3 + $0x1], 0  ;;  %s2070_s24 = smov 0   ;;  %s2072_s25 = smov 0  }
   0x2   :  { %s2074_s26 = smov 0   ;;  %s2076_s27 = smov 0  }
   0x3 LB: > { %s2091_s28 = sadd.s32 4294967295, %s2024_s27   ;;  %s1597_s29 = sadd.s32 4294967294, %s2024_s27   ;;  %s2024_s27 = sphi %s2076_s27, %s2902_s27   ;;  %s2020_s26 = sphi %s2074_s26, %s2901_s26   ;;  %s2016_s25 = sphi %s2072_s25, %s2900_s25   ;;  %s2012_s24 = sphi %s2070_s24, %s2899_s24  }
   0x4   : > { %s2095_s30 = sadd.s32 1, %s2024_s27   ;;  %s179_s8 = sadd.s32 1, %s2020_s26 }
   0x5   : > { %s176_s9 = ssub.s32 %s2024_s27, %s2095_s30  ;;  %p189_p0 = scmp.ne.s32.totalorder %s2020_s26, %s2016_s25 }
   0x6   : > { %p177_p1 = scmp.eq.s32.totalorder %s176_s9, 0  ;;  %p190_p2 = scmp.eq.s32.totalorder %s2091_s28, 1 }
   0x7   : > { %p195_p3 = scmp.ne.s32.totalorder %s2016_s25, %s2012_s24  ;;  %p196_p4 = scmp.eq.s32.totalorder %s1597_s29, 1 }
   0x8   : > { %s2106_s10 = scalar_select %p177_p1, %s2020_s26, %s179_s8  }
   0x9   : > { %p2108_p5 = por %p190_p2, %p189_p0  ;;  %p2112_p6 = por %p196_p4, %p195_p3 }
   0xa   : > { %p1600_p7 = scmp.ge.s32.totalorder %s2024_s27, 1  ;;  %p240_p8 = scmp.lt.s32.totalorder %s2024_s27, 3 }
   0xc   : > { %p241_p9 = pnand %p1600_p7, %p240_p8 }
   0xe   : > { %244 = sbr.rel (%p241_p9) target bundleno = 2055 (0x807), region = 48 }
  0x15   : > { %p272_p10 = scmp.lt.s32.totalorder %s2091_s28, 1  ;;  %vm281_vm0 = vcmask 1043456   ;;  %v320_v5 = vld [vmem:[%s2806_s1] sm:$0xf]  ;;  %v2026_v6 = vmov 0   ;;  %v2027_v29 = vmov 0.0   ;;  %v328_v35 = vlaneseq }
  0x16   : > { %1764 = vset.pattern.permute.xlu1 %v2026_v6  ;;  %1765 = vset.pattern.permute.xlu0 %v2026_v6  ;;  %v334_v7 = vld [vmem:[%s2807_s2] sm:$0xf]  ;;  %v2028_v33 = vmov 839922192   ;;  %vm364_vm1 = vcmask 31744  }
  0x17   : > { %s273_s13 = scalar_select %p272_p10, %s2091_s28, 1  ;;  %323 = vperm.xlu1 %1764, %v320_v5   ;;  %439 = vmatprep.mubr.f32.mxu0 %v2027_v29  ;;  %v350_v30 = vld [vmem:[%s2809_s4] sm:$0xff]  ;;  %v326_v34 = vunpack.c.l.s4 %v2028_v33  ;;  %v329_v37 = vshrl.u32 %v328_v35, 7 }
  0x18   : > { %686 = vmatprep.mubr.f32.mxu1 %v2027_v29  ;;  %v348_v48 = vld [vmem:[%s2808_s3] sm:$0xff] }
  0x19   : > { %s1650_s14 = sshll.u32 %s273_s13, 3  ;;  %v327_v36 = vunpack.c.0.s8 %v326_v34 }
  0x1a   : > { %s2123_s17 = scalar_lea.vmem %s2805_s0, %s1650_s14 }
  0x1b   : > { %v277_v0 = vld [vmem:[%s2123_s17] sm:$0xff]  ;;  %337 = vperm.xlu1 %1764, %v334_v7   ;;  %v330_v39 = vsub.s32 %v327_v36, %v329_v37 }
  0x1c   : > { %v279_v1 = vcombine.high %v277_v0, %v277_v0  ;;  %v282_v2 = vsel %vm281_vm0, %v277_v0, 0.0 }
  0x1e   : > { %v283_v3 = vsel %vm281_vm0, %v279_v1, 0.0 }
  0x1f   : > { %v284_v4 = vadd.f32 %v283_v3, %v282_v2 }
  0x21   : > { %285 = vadd.xlane.f32.xlu0 %v284_v4 }
  0x96   : > { %v324_v38 = vpop.permute.xlu1 %323 }
  0x97   : > { %v331_v42 = vrot.slane %v324_v38, %v330_v39 }
  0x9a   : > { %v338_v40 = vpop.permute.xlu1 %337 }
  0x9b   : > { %v345_v44 = vrot.slane %v338_v40, %v330_v39 }
  0xae   : > { %v286_v8 = vpop.xlane.xlu0 %285 }
  0xaf   : > { %v287_v9 = vrot.slane %v286_v8, 4 }
  0xb1   : > { %v288_v10 = vadd.f32 %v287_v9, %v286_v8 }
  0xb3   : > { %v289_v11 = vrot.slane %v288_v10, 2 }
  0xb5   : > { %v290_v12 = vadd.f32 %v289_v11, %v288_v10 }
  0xb7   : > { %v291_v13 = vrot.slane %v290_v12, 1 }
  0xb9   : > { %v292_v14 = vadd.f32 %v291_v13, %v290_v12 }
  0xbb   : > { %1716 = vpush %v292_v14 }
  0xec   : > { %s1717_s22 = spop %1716 }
  0xed   : > { %s294_s23 = smul.f32 0.0009765625, %s1717_s22 }
  0xef   : > { %v295_v15 = vstv %s294_s23 }
  0xf0   : > { %v296_v16 = vsub.f32 %v277_v0, %v295_v15 }
  0xf2   : > { %v297_v17 = vmul.f32 %v296_v16, %v296_v16 }
  0xf4   : > { %v299_v18 = vcombine.high %v297_v17, %v297_v17  ;;  %v301_v19 = vsel %vm281_vm0, %v297_v17, 0.0 }
  0xf6   : > { %v302_v20 = vsel %vm281_vm0, %v299_v18, 0.0 }
  0xf7   : > { %v303_v21 = vadd.f32 %v302_v20, %v301_v19 }
  0xf9   : > { %304 = vadd.xlane.f32.xlu0 %v303_v21 }
 0x10f   : > { %354 = vperm.xlu0 %1765, %v350_v30  }
 0x186   : > { %v305_v22 = vpop.xlane.xlu0 %304 }
 0x187   : > { %v306_v23 = vrot.slane %v305_v22, 4 }
 0x189   : > { %v307_v24 = vadd.f32 %v306_v23, %v305_v22 }
 0x18b   : > { %v308_v25 = vrot.slane %v307_v24, 2 }
 0x18d   : > { %v309_v26 = vadd.f32 %v308_v25, %v307_v24 }
 0x18e   : > { %v355_v49 = vpop.permute.xlu0 %354 }
 0x18f   : > { %v310_v27 = vrot.slane %v309_v26, 1 }
 0x191   : > { %v311_v28 = vadd.f32 %v310_v27, %v309_v26 }
 0x193   : > { %1718 = vpush %v311_v28 }
 0x1c4   : > { %s1719_s9 = spop %1718 }
 0x1c5   : > { %s313_s13 = smul.f32 0.0009765625, %s1719_s9 }
 0x1c7   : > { %s314_s14 = sadd.f32 1e-05, %s313_s13  ;;  %s269_s13 = sand.u32 1, %s2016_s25  }
 0x1c8   : > { %s1524_s22 = scalar_lea.sflag [#allocation3], %s269_s13 }
 0x1c9   : > { %v315_v31 = vstv %s314_s14  ;;  %s1601_s14 = sshll.u32 %s269_s13, 3 }
 0x1ca   : > { %1767 = vrsqrt.f32 %v315_v31  ;;  %s271_s16 = scalar_lea.vmem [#allocation2], %s1601_s14 }
 0x1cb   : > { %s1538_s18 = sshll.u32 %s271_s16, 4  ;;  %s2765_s18 = int_to_ptr.vmem [resolvable:$true] %s1538_s18 }
 0x1cc   : > { %s1962_s23 = scalar_lea.vmem %s2765_s18, 128 }
 0x1cd   : > { %p1963_p11 = scmp.ne.s32.totalorder %s2765_s18, %s1962_s23 }
 0x1cf   : > { %p1964_p12 = pnand %p1963_p11, %p2108_p5 }
 0x1d1   : > { %p1965_p13 = pneg %p1964_p12 }
 0x1d4   : > { %v1768_v32 = vpop.eup %1767 }
 0x1d5   : > { %1720 = vpush %v1768_v32 }
 0x206   : > { %s1721_s15 = spop %1720 }
 0x207   : > { %v318_v41 = vstv %s1721_s15  ;;  %s1651_s15 = sshll.u32 %s2091_s28, 7  ;;  %s2029_s28 = smov [#allocation2]  }
 0x208   : > { %v319_v43 = vmul.f32 %v318_v41, %v296_v16  ;;  %s2763_s21 = scalar_lea.hbm %s2812_s7, %s1651_s15 }
 0x20a   : > { %v333_v45 = vmul.f32 %v331_v42, %v319_v43 }
 0x20c   : > { %v347_v46 = vadd.f32 %v345_v44, %v333_v45 }
 0x20e   : > { %v363_v47 = vcombine.high %v347_v46, %v347_v46 }
 0x210   : > { %1604 = vmatprep.subr.msk.mxu0 %vm281_vm0, %v363_v47 }
 0x211   : > { %1605 = vmatpush1.msk.msra.mxu0 %vm281_vm0, %v347_v46 }
 0x212   : > { %1606 = vmatmul.mubr.msk.f32.vlgmr.msra.gmra.mrb[0].mxu0 %vm364_vm1, %v348_v48 }
 0x213   : > { %445 = vmatprep.mubr.f32.mxu0 %v2027_v29 }
 0x2e5   : > { %v441_v50 = vpop.f32.mrb[0].mxu0 }
 0x2e6   : > { %v442_v51 = vadd.f32 %v441_v50, %v355_v49  ;;  %v443_v52 = vpop.f32.mrb[1].mxu0 }
 0x2e7   : > { %v444_v53 = vadd.f32 %v443_v52, %v355_v49 }
 0x2e8   : > { %v452_v54 = vmul.f32 0.70710677, %v442_v51 }
 0x2e9   : > { %v453_v55 = vmul.f32 0.70710677, %v444_v53 }
 0x2ea   : > { %454 = vxpose.xlu1.b32.start.end [1/1] (short) %v452_v54, 128  ;;  %v520_v57 = vrot.slane %v452_v54, 4 }
 0x2eb   : > { %v521_v56 = vrot.slane %v453_v55, 4 }
 0x2ed   : > { %1608 = vmatprep.subr.msk.mxu1 %vm281_vm0, %v521_v56 }
 0x2ee   : > { %1609 = vmatpush1.msk.msra.mxu1 %vm281_vm0, %v520_v57 }
 0x327   : > { %486 = vxpose.xlu1.b32.start.end [1/1] (short) %v453_v55, 128 }
 0x36a   : > { %v470_v58 = vpop.trf.xlu1 }
 0x36b   : > { %1610 = vmatmul.mubr.msk.f32.vlgmr.msra.gmra.mrb[0].mxu1 %vm364_vm1, %v470_v58 }
 0x36c   : > { %692 = vmatprep.mubr.f32.mxu1 %v2027_v29 }
 0x36e   : > { %v471_v59 = vpop.trf.xlu1 }
 0x36f   : > { %1611 = vmatmul.mubr.msk.f32.gmra.mrb[2].mxu1 %vm364_vm1, %v471_v59 }
 0x370   : > { %698 = vmatprep.mubr.f32.mxu1 %v2027_v29 }
 0x372   : > { %v472_v60 = vpop.trf.xlu1 }
 0x373   : > { %1612 = vmatmul.mubr.msk.f32.gmra.mrb[4].mxu1 %vm364_vm1, %v472_v60 }
 0x374   : > { %704 = vmatprep.mubr.f32.mxu1 %v2027_v29 }
 0x376   : > { %v473_v61 = vpop.trf.xlu1 }
 0x377   : > { %1613 = vmatmul.mubr.msk.f32.gmra.mrb[6].mxu1 %vm364_vm1, %v473_v61 }
 0x378   : > { %710 = vmatprep.mubr.f32.mxu1 %v2027_v29 }
 0x37a   : > { %v474_v62 = vpop.trf.xlu1 }
 0x37b   : > { %1614 = vmatmul.mubr.msk.f32.gmra.mrb[8].mxu1 %vm364_vm1, %v474_v62 }
 0x37c   : > { %716 = vmatprep.mubr.f32.mxu1 %v2027_v29 }
 0x37e   : > { %v475_v63 = vpop.trf.xlu1 }
 0x37f   : > { %1615 = vmatmul.mubr.msk.f32.gmra.mrb[10].mxu1 %vm364_vm1, %v475_v63 }
 0x380   : > { %722 = vmatprep.mubr.f32.mxu1 %v2027_v29 }
 0x382   : > { %v476_v0 = vpop.trf.xlu1 }
 0x383   : > { %1616 = vmatmul.mubr.msk.f32.gmra.mrb[12].mxu1 %vm364_vm1, %v476_v0 }
 0x384   : > { %728 = vmatprep.mubr.f32.mxu1 %v2027_v29 }
 0x386   : > { %v477_v1 = vpop.trf.xlu1 }
 0x387   : > { %1617 = vmatmul.mubr.msk.f32.gmra.mrb[14].mxu1 %vm364_vm1, %v477_v1 }
 0x388   : > { %734 = vmatprep.mubr.f32.mxu1 %v2027_v29 }
 0x38a   : > { %v478_v2 = vpop.trf.xlu1 }
 0x38b   : > { %1618 = vmatmul.mubr.msk.f32.gmra.mrb[16].mxu1 %vm364_vm1, %v478_v2 }
 0x38c   : > { %740 = vmatprep.mubr.f32.mxu1 %v2027_v29 }
 0x38e   : > { %v479_v3 = vpop.trf.xlu1 }
 0x38f   : > { %1619 = vmatmul.mubr.msk.f32.gmra.mrb[18].mxu1 %vm364_vm1, %v479_v3 }
 0x390   : > { %746 = vmatprep.mubr.f32.mxu1 %v2027_v29 }
 0x392   : > { %v480_v4 = vpop.trf.xlu1 }
 0x393   : > { %1620 = vmatmul.mubr.msk.f32.gmra.mrb[20].mxu1 %vm364_vm1, %v480_v4 }
 0x394   : > { %752 = vmatprep.mubr.f32.mxu1 %v2027_v29 }
 0x396   : > { %v481_v5 = vpop.trf.xlu1 }
 0x397   : > { %1621 = vmatmul.mubr.msk.f32.gmra.mrb[22].mxu1 %vm364_vm1, %v481_v5 }
 0x398   : > { %758 = vmatprep.mubr.f32.mxu1 %v2027_v29 }
 0x39a   : > { %v482_v6 = vpop.trf.xlu1 }
 0x39b   : > { %1622 = vmatmul.mubr.msk.f32.gmra.mrb[24].mxu1 %vm364_vm1, %v482_v6 }
 0x39c   : > { %764 = vmatprep.mubr.f32.mxu1 %v2027_v29 }
 0x39e   : > { %v483_v7 = vpop.trf.xlu1 }
 0x39f   : > { %1623 = vmatmul.mubr.msk.f32.gmra.mrb[26].mxu1 %vm364_vm1, %v483_v7 }
 0x3a0   : > { %770 = vmatprep.mubr.f32.mxu1 %v2027_v29 }
 0x3a2   : > { %v484_v8 = vpop.trf.xlu1 }
 0x3a3   : > { %1624 = vmatmul.mubr.msk.f32.gmra.mrb[28].mxu1 %vm364_vm1, %v484_v8 }
 0x3a4   : > { %776 = vmatprep.mubr.f32.mxu1 %v2027_v29 }
 0x3a6   : > { %v485_v9 = vpop.trf.xlu1 }
 0x3a7   : > { %1625 = vmatmul.mubr.msk.f32.gmra.mrb[30].mxu1 %vm364_vm1, %v485_v9 }
 0x3a8   : > { %782 = vmatprep.mubr.f32.mxu1 %v2027_v29 }
 0x3aa   : > { %v502_v10 = vpop.trf.xlu1 }
 0x3ab   : > { %1626 = vmatmul.mubr.msk.f32.gmra.mrb[32].mxu1 %vm364_vm1, %v502_v10 }
 0x3ac   : > { %788 = vmatprep.mubr.f32.mxu1 %v2027_v29 }
 0x3ae   : > { %v503_v11 = vpop.trf.xlu1 }
 0x3af   : > { %1627 = vmatmul.mubr.msk.f32.gmra.mrb[34].mxu1 %vm364_vm1, %v503_v11 }
 0x3b0   : > { %794 = vmatprep.mubr.f32.mxu1 %v2027_v29 }
 0x3b2   : > { %v504_v12 = vpop.trf.xlu1 }
 0x3b3   : > { %1628 = vmatmul.mubr.msk.f32.gmra.mrb[36].mxu1 %vm364_vm1, %v504_v12 }
 0x3b4   : > { %800 = vmatprep.mubr.f32.mxu1 %v2027_v29 }
 0x3b6   : > { %v505_v13 = vpop.trf.xlu1 }
 0x3b7   : > { %1629 = vmatmul.mubr.msk.f32.gmra.mrb[38].mxu1 %vm364_vm1, %v505_v13 }
 0x3b8   : > { %806 = vmatprep.mubr.f32.mxu1 %v2027_v29 }
 0x3ba   : > { %v506_v14 = vpop.trf.xlu1 }
 0x3bb   : > { %1630 = vmatmul.mubr.msk.f32.gmra.mrb[40].mxu1 %vm364_vm1, %v506_v14 }
 0x3bc   : > { %812 = vmatprep.mubr.f32.mxu1 %v2027_v29 }
 0x3be   : > { %v507_v15 = vpop.trf.xlu1 }
 0x3bf   : > { %1631 = vmatmul.mubr.msk.f32.gmra.mrb[42].mxu1 %vm364_vm1, %v507_v15 }
 0x3c0   : > { %818 = vmatprep.mubr.f32.mxu1 %v2027_v29 }
 0x3c2   : > { %v508_v16 = vpop.trf.xlu1 }
 0x3c3   : > { %1632 = vmatmul.mubr.msk.f32.gmra.mrb[44].mxu1 %vm364_vm1, %v508_v16 }
 0x3c4   : > { %824 = vmatprep.mubr.f32.mxu1 %v2027_v29 }
 0x3c6   : > { %v509_v17 = vpop.trf.xlu1 }
 0x3c7   : > { %1633 = vmatmul.mubr.msk.f32.gmra.mrb[46].mxu1 %vm364_vm1, %v509_v17 }
 0x3c8   : > { %830 = vmatprep.mubr.f32.mxu1 %v2027_v29 }
 0x3ca   : > { %v510_v18 = vpop.trf.xlu1 }
 0x3cb   : > { %1634 = vmatmul.mubr.msk.f32.gmra.mrb[48].mxu1 %vm364_vm1, %v510_v18 }
 0x3cc   : > { %836 = vmatprep.mubr.f32.mxu1 %v2027_v29 }
 0x3ce   : > { %v511_v19 = vpop.trf.xlu1 }
 0x3cf   : > { %1635 = vmatmul.mubr.msk.f32.gmra.mrb[50].mxu1 %vm364_vm1, %v511_v19 }
 0x3d0   : > { %842 = vmatprep.mubr.f32.mxu1 %v2027_v29 }
 0x3d2   : > { %v512_v20 = vpop.trf.xlu1 }
 0x3d3   : > { %1636 = vmatmul.mubr.msk.f32.gmra.mrb[52].mxu1 %vm364_vm1, %v512_v20 }
 0x3d4   : > { %848 = vmatprep.mubr.f32.mxu1 %v2027_v29 }
 0x3d6   : > { %v513_v21 = vpop.trf.xlu1 }
 0x3d7   : > { %1637 = vmatmul.mubr.msk.f32.gmra.mrb[54].mxu1 %vm364_vm1, %v513_v21 }
 0x3d8   : > { %854 = vmatprep.mubr.f32.mxu1 %v2027_v29 }
 0x3da   : > { %v514_v22 = vpop.trf.xlu1 }
 0x3db   : > { %1638 = vmatmul.mubr.msk.f32.gmra.mrb[56].mxu1 %vm364_vm1, %v514_v22 }
 0x3dc   : > { %860 = vmatprep.mubr.f32.mxu1 %v2027_v29 }
 0x3de   : > { %v515_v23 = vpop.trf.xlu1 }
 0x3df   : > { %1639 = vmatmul.mubr.msk.f32.gmra.mrb[58].mxu1 %vm364_vm1, %v515_v23 }
 0x3e0   : > { %866 = vmatprep.mubr.f32.mxu1 %v2027_v29 }
 0x3e2   : > { %v516_v24 = vpop.trf.xlu1 }
 0x3e3   : > { %1640 = vmatmul.mubr.msk.f32.gmra.mrb[60].mxu1 %vm364_vm1, %v516_v24 }
 0x3e4   : > { %872 = vmatprep.mubr.f32.mxu1 %v2027_v29 }
 0x3e6   : > { %v517_v25 = vpop.trf.xlu1 }
 0x3e7   : > { %1641 = vmatmul.mubr.msk.f32.gmra.mrb[62].mxu1 %vm364_vm1, %v517_v25 }
 0x3e8   : > { %1510 = vmatprep.mubr.f32.mxu1 %v2027_v29 }
 0x43e   : > { %v2214_v26 = vpop.f32.mrb[0].mxu1 }
 0x43f   : > { %v2216_v27 = vpop.f32.mrb[1].mxu1 }
 0x440   : > { %v879_v28 = vmax.f32 %v2214_v26, %v2216_v27 }
 0x442   : > { %880 = vmax.xlane.f32.xlu0 %v879_v28  ;;  %v2220_v30 = vpop.f32.mrb[2].mxu1 }
 0x443   : > { %v2222_v31 = vpop.f32.mrb[3].mxu1 }
 0x444   : > { %v882_v32 = vmax.f32 %v2220_v30, %v2222_v31 }
 0x446   : > { %883 = vmax.xlane.f32.xlu0 %v882_v32  ;;  %v2226_v33 = vpop.f32.mrb[4].mxu1 }
 0x447   : > { %v2228_v34 = vpop.f32.mrb[5].mxu1 }
 0x448   : > { %v885_v29 = vmax.f32 %v2226_v33, %v2228_v34 }
 0x44a   : > { %886 = vmax.xlane.f32.xlu0 %v885_v29  ;;  %v2232_v35 = vpop.f32.mrb[6].mxu1 }
 0x44b   : > { %v2234_v36 = vpop.f32.mrb[7].mxu1 }
 0x44c   : > { %v888_v37 = vmax.f32 %v2232_v35, %v2234_v36 }
 0x44e   : > { %889 = vmax.xlane.f32.xlu0 %v888_v37  ;;  %v2238_v38 = vpop.f32.mrb[8].mxu1 }
 0x44f   : > { %v2240_v39 = vpop.f32.mrb[9].mxu1 }
 0x450   : > { %v891_v40 = vmax.f32 %v2238_v38, %v2240_v39 }
 0x452   : > { %892 = vmax.xlane.f32.xlu0 %v891_v40  ;;  %v2244_v41 = vpop.f32.mrb[10].mxu1 }
 0x453   : > { %v2246_v42 = vpop.f32.mrb[11].mxu1 }
 0x454   : > { %v894_v43 = vmax.f32 %v2244_v41, %v2246_v42 }
 0x456   : > { %895 = vmax.xlane.f32.xlu0 %v894_v43  ;;  %v2250_v44 = vpop.f32.mrb[12].mxu1 }
 0x457   : > { %v2252_v45 = vpop.f32.mrb[13].mxu1 }
 0x458   : > { %v897_v46 = vmax.f32 %v2250_v44, %v2252_v45 }
 0x45a   : > { %898 = vmax.xlane.f32.xlu0 %v897_v46  ;;  %v2256_v47 = vpop.f32.mrb[14].mxu1 }
 0x45b   : > { %v2258_v48 = vpop.f32.mrb[15].mxu1 }
 0x45c   : > { %v900_v49 = vmax.f32 %v2256_v47, %v2258_v48 }
 0x45e   : > { %901 = vmax.xlane.f32.xlu0 %v900_v49  ;;  %v2262_v50 = vpop.f32.mrb[16].mxu1 }
 0x45f   : > { %v2264_v51 = vpop.f32.mrb[17].mxu1 }
 0x460   : > { %v903_v52 = vmax.f32 %v2262_v50, %v2264_v51 }
 0x462   : > { %904 = vmax.xlane.f32.xlu1 %v903_v52  ;;  %v2268_v53 = vpop.f32.mrb[18].mxu1 }
 0x463   : > { %v2270_v54 = vpop.f32.mrb[19].mxu1 }
 0x464   : > { %v906_v55 = vmax.f32 %v2268_v53, %v2270_v54 }
 0x466   : > { %907 = vmax.xlane.f32.xlu0 %v906_v55  ;;  %v2274_v56 = vpop.f32.mrb[20].mxu1 }
 0x467   : > { %v2276_v57 = vpop.f32.mrb[21].mxu1 }
 0x468   : > { %v909_v58 = vmax.f32 %v2274_v56, %v2276_v57 }
 0x46a   : > { %910 = vmax.xlane.f32.xlu0 %v909_v58  ;;  %v2280_v59 = vpop.f32.mrb[22].mxu1 }
 0x46b   : > { %v2282_v60 = vpop.f32.mrb[23].mxu1 }
 0x46c   : > { %v912_v61 = vmax.f32 %v2280_v59, %v2282_v60 }
 0x46e   : > { %913 = vmax.xlane.f32.xlu0 %v912_v61  ;;  %v2286_v62 = vpop.f32.mrb[24].mxu1 }
 0x46f   : > { %v2288_v63 = vpop.f32.mrb[25].mxu1 }
 0x470   : > { %v915_v0 = vmax.f32 %v2286_v62, %v2288_v63 }
 0x472   : > { %916 = vmax.xlane.f32.xlu0 %v915_v0  ;;  %v2292_v1 = vpop.f32.mrb[26].mxu1 }
 0x473   : > { %v2294_v2 = vpop.f32.mrb[27].mxu1 }
 0x474   : > { %v918_v3 = vmax.f32 %v2292_v1, %v2294_v2 }
 0x476   : > { %919 = vmax.xlane.f32.xlu0 %v918_v3  ;;  %v2298_v4 = vpop.f32.mrb[28].mxu1 }
 0x477   : > { %v2300_v5 = vpop.f32.mrb[29].mxu1 }
 0x478   : > { %v921_v6 = vmax.f32 %v2298_v4, %v2300_v5 }
 0x47a   : > { %922 = vmax.xlane.f32.xlu0 %v921_v6  ;;  %v2304_v7 = vpop.f32.mrb[30].mxu1 }
 0x47b   : > { %v2306_v8 = vpop.f32.mrb[31].mxu1 }
 0x47c   : > { %v924_v9 = vmax.f32 %v2304_v7, %v2306_v8 }
 0x47e   : > { %925 = vmax.xlane.f32.xlu0 %v924_v9  ;;  %v2310_v10 = vpop.f32.mrb[32].mxu1 }
 0x47f   : > { %v2312_v11 = vpop.f32.mrb[33].mxu1 }
 0x480   : > { %v927_v12 = vmax.f32 %v2310_v10, %v2312_v11 }
 0x482   : > { %928 = vmax.xlane.f32.xlu0 %v927_v12  ;;  %v2316_v13 = vpop.f32.mrb[34].mxu1 }
 0x483   : > { %v2318_v14 = vpop.f32.mrb[35].mxu1 }
 0x484   : > { %v930_v15 = vmax.f32 %v2316_v13, %v2318_v14 }
 0x486   : > { %931 = vmax.xlane.f32.xlu0 %v930_v15  ;;  %v2322_v16 = vpop.f32.mrb[36].mxu1 }
 0x487   : > { %v2324_v17 = vpop.f32.mrb[37].mxu1 }
 0x488   : > { %v933_v18 = vmax.f32 %v2322_v16, %v2324_v17 }
 0x48a   : > { %934 = vmax.xlane.f32.xlu0 %v933_v18  ;;  %v2328_v19 = vpop.f32.mrb[38].mxu1 }
 0x48b   : > { %v2330_v20 = vpop.f32.mrb[39].mxu1 }
 0x48c   : > { %v936_v21 = vmax.f32 %v2328_v19, %v2330_v20 }
 0x48e   : > { %937 = vmax.xlane.f32.xlu0 %v936_v21  ;;  %v2334_v22 = vpop.f32.mrb[40].mxu1 }
 0x48f   : > { %v2336_v23 = vpop.f32.mrb[41].mxu1 }
 0x490   : > { %v939_v24 = vmax.f32 %v2334_v22, %v2336_v23 }
 0x492   : > { %940 = vmax.xlane.f32.xlu0 %v939_v24  ;;  %v2340_v25 = vpop.f32.mrb[42].mxu1 }
 0x493   : > { %v2342_v28 = vpop.f32.mrb[43].mxu1 }
 0x494   : > { %v942_v32 = vmax.f32 %v2340_v25, %v2342_v28 }
 0x496   : > { %943 = vmax.xlane.f32.xlu0 %v942_v32  ;;  %v2346_v29 = vpop.f32.mrb[44].mxu1 }
 0x497   : > { %v2348_v37 = vpop.f32.mrb[45].mxu1 }
 0x498   : > { %v945_v40 = vmax.f32 %v2346_v29, %v2348_v37 }
 0x49a   : > { %946 = vmax.xlane.f32.xlu0 %v945_v40  ;;  %v2352_v43 = vpop.f32.mrb[46].mxu1 }
 0x49b   : > { %2842 = vst [vmem:[#allocation5_spill] sm:$0xff] %v2352_v43  ;;  %v2354_v46 = vpop.f32.mrb[47].mxu1 }
 0x49c   : > { %2843 = vst [vmem:[#allocation6_spill] sm:$0xff] %v2354_v46  ;;  %v948_v49 = vmax.f32 %v2352_v43, %v2354_v46 }
 0x49e   : > { %949 = vmax.xlane.f32.xlu0 %v948_v49  ;;  %v2358_v52 = vpop.f32.mrb[48].mxu1 }
 0x49f   : > { %2844 = vst [vmem:[#allocation7_spill] sm:$0xff] %v2358_v52  ;;  %v2360_v55 = vpop.f32.mrb[49].mxu1 }
 0x4a0   : > { %2845 = vst [vmem:[#allocation8_spill] sm:$0xff] %v2360_v55  ;;  %v951_v58 = vmax.f32 %v2358_v52, %v2360_v55 }
 0x4a2   : > { %952 = vmax.xlane.f32.xlu0 %v951_v58  ;;  %v2364_v61 = vpop.f32.mrb[50].mxu1 }
 0x4a3   : > { %2846 = vst [vmem:[#allocation9_spill] sm:$0xff] %v2364_v61  ;;  %v2366_v0 = vpop.f32.mrb[51].mxu1 }
 0x4a4   : > { %2847 = vst [vmem:[#allocation10_spill] sm:$0xff] %v2366_v0  ;;  %v954_v3 = vmax.f32 %v2364_v61, %v2366_v0  ;;  %v349_v61 = vld [vmem:[%s2808_s3 + $0x8] sm:$0xf] }
 0x4a5   : > { %1607 = vmatmul.mubr.msk.f32.gmra.mrb[2].mxu0 %vm364_vm1, %v349_v61 }
 0x4a6   : > { %955 = vmax.xlane.f32.xlu0 %v954_v3  ;;  %v2370_v6 = vpop.f32.mrb[52].mxu1 }
 0x4a7   : > { %2848 = vst [vmem:[#allocation11_spill] sm:$0xff] %v2370_v6  ;;  %v2372_v9 = vpop.f32.mrb[53].mxu1 }
 0x4a8   : > { %2849 = vst [vmem:[#allocation12_spill] sm:$0xff] %v2372_v9  ;;  %v957_v12 = vmax.f32 %v2370_v6, %v2372_v9 }
 0x4aa   : > { %958 = vmax.xlane.f32.xlu0 %v957_v12  ;;  %v2376_v15 = vpop.f32.mrb[54].mxu1 }
 0x4ab   : > { %2850 = vst [vmem:[#allocation13_spill] sm:$0xff] %v2376_v15  ;;  %v2378_v18 = vpop.f32.mrb[55].mxu1 }
 0x4ac   : > { %2851 = vst [vmem:[#allocation14_spill] sm:$0xff] %v2378_v18  ;;  %v960_v21 = vmax.f32 %v2376_v15, %v2378_v18 }
 0x4ae   : > { %961 = vmax.xlane.f32.xlu0 %v960_v21  ;;  %v2382_v24 = vpop.f32.mrb[56].mxu1 }
 0x4af   : > { %2852 = vst [vmem:[#allocation15_spill] sm:$0xff] %v2382_v24  ;;  %v2384_v32 = vpop.f32.mrb[57].mxu1 }
 0x4b0   : > { %2853 = vst [vmem:[#allocation16_spill] sm:$0xff] %v2384_v32  ;;  %v963_v40 = vmax.f32 %v2382_v24, %v2384_v32 }
 0x4b2   : > { %964 = vmax.xlane.f32.xlu1 %v963_v40  ;;  %v2388_v49 = vpop.f32.mrb[58].mxu1 }
 0x4b3   : > { %v2390_v58 = vpop.f32.mrb[59].mxu1 }
 0x4b6   : > { %v2394_v12 = vpop.f32.mrb[60].mxu1 }
 0x4b7   : > { %v2396_v9 = vpop.f32.mrb[61].mxu1 }
 0x4ba   : > { %v2400_v18 = vpop.f32.mrb[62].mxu1 }
 0x4bb   : > { %v2402_v15 = vpop.f32.mrb[63].mxu1 }
 0x4cf   : > { %v881_v32 = vpop.xlane.xlu0 %880 }
 0x4d0   : > { %v975_v24 = vsub.f32 %v2214_v26, %v881_v32  ;;  %v976_v6 = vsub.f32 %v2216_v27, %v881_v32 }
 0x4d2   : > { %v1039_v3 = vmul.f32 1.442695, %v975_v24  ;;  %v1041_v0 = vmul.f32 1.442695, %v976_v6 }
 0x4d3   : > { %v884_v55 = vpop.xlane.xlu0 %883 }
 0x4d4   : > { %1769 = vpow2.f32 %v1039_v3  ;;  %v977_v21 = vsub.f32 %v2220_v30, %v884_v55  ;;  %v978_v52 = vsub.f32 %v2222_v31, %v884_v55 }
 0x4d5   : > { %1771 = vpow2.f32 %v1041_v0 }
 0x4d6   : > { %v1043_v40 = vmul.f32 1.442695, %v977_v21  ;;  %v1045_v46 = vmul.f32 1.442695, %v978_v52 }
 0x4d7   : > { %v887_v26 = vpop.xlane.xlu0 %886 }
 0x4d8   : > { %1773 = vpow2.f32 %v1043_v40  ;;  %v979_v27 = vsub.f32 %v2226_v33, %v887_v26  ;;  %v980_v6 = vsub.f32 %v2228_v34, %v887_v26 }
 0x4d9   : > { %1775 = vpow2.f32 %v1045_v46 }
 0x4da   : > { %v1047_v24 = vmul.f32 1.442695, %v979_v27  ;;  %v1049_v32 = vmul.f32 1.442695, %v980_v6 }
 0x4db   : > { %v890_v43 = vpop.xlane.xlu0 %889 }
 0x4dc   : > { %1777 = vpow2.f32 %v1047_v24  ;;  %v981_v61 = vsub.f32 %v2232_v35, %v890_v43  ;;  %v982_v30 = vsub.f32 %v2234_v36, %v890_v43 }
 0x4dd   : > { %1779 = vpow2.f32 %v1049_v32 }
 0x4de   : > { %v2418_v31 = vpop.eup %1769  ;;  %v1051_v55 = vmul.f32 1.442695, %v981_v61  ;;  %v1053_v52 = vmul.f32 1.442695, %v982_v30 }
 0x4df   : > { %v2420_v0 = vpop.eup %1771  ;;  %v893_v3 = vpop.xlane.xlu0 %892 }
 0x4e0   : > { %1781 = vpow2.f32 %v1051_v55  ;;  %v983_v33 = vsub.f32 %v2238_v38, %v893_v3  ;;  %v984_v34 = vsub.f32 %v2240_v39, %v893_v3  ;;  %v1167_v46 = vadd.f32 %v2420_v0, %v2418_v31 }
 0x4e1   : > { %1783 = vpow2.f32 %v1053_v52 }
 0x4e2   : > { %v2426_v35 = vpop.eup %1773  ;;  %v1055_v36 = vmul.f32 1.442695, %v983_v33  ;;  %v1057_v43 = vmul.f32 1.442695, %v984_v34  ;;  %1168 = vadd.xlane.f32.xlu0 %v1167_v46 }
 0x4e3   : > { %v2428_v21 = vpop.eup %1775  ;;  %v896_v40 = vpop.xlane.xlu0 %895 }
 0x4e4   : > { %1785 = vpow2.f32 %v1055_v36  ;;  %v985_v26 = vsub.f32 %v2244_v41, %v896_v40  ;;  %v986_v27 = vsub.f32 %v2246_v42, %v896_v40  ;;  %v1170_v38 = vadd.f32 %v2428_v21, %v2426_v35 }
 0x4e5   : > { %1787 = vpow2.f32 %v1057_v43 }
 0x4e6   : > { %v2434_v39 = vpop.eup %1777  ;;  %v1059_v6 = vmul.f32 1.442695, %v985_v26  ;;  %v1061_v24 = vmul.f32 1.442695, %v986_v27  ;;  %1171 = vadd.xlane.f32.xlu0 %v1170_v38 }
 0x4e7   : > { %v2436_v32 = vpop.eup %1779  ;;  %v899_v61 = vpop.xlane.xlu0 %898 }
 0x4e8   : > { %1789 = vpow2.f32 %v1059_v6  ;;  %v987_v30 = vsub.f32 %v2250_v44, %v899_v61  ;;  %v988_v55 = vsub.f32 %v2252_v45, %v899_v61  ;;  %v1173_v41 = vadd.f32 %v2436_v32, %v2434_v39 }
 0x4e9   : > { %1791 = vpow2.f32 %v1061_v24 }
 0x4ea   : > { %v2442_v42 = vpop.eup %1781  ;;  %v1063_v52 = vmul.f32 1.442695, %v987_v30  ;;  %v1065_v3 = vmul.f32 1.442695, %v988_v55  ;;  %1174 = vadd.xlane.f32.xlu0 %v1173_v41 }
 0x4eb   : > { %v2444_v33 = vpop.eup %1783  ;;  %v902_v34 = vpop.xlane.xlu0 %901 }
 0x4ec   : > { %1793 = vpow2.f32 %v1063_v52  ;;  %v989_v46 = vsub.f32 %v2256_v47, %v902_v34  ;;  %v990_v36 = vsub.f32 %v2258_v48, %v902_v34  ;;  %v1176_v44 = vadd.f32 %v2444_v33, %v2442_v42 }
 0x4ed   : > { %1795 = vpow2.f32 %v1065_v3 }
 0x4ee   : > { %v2450_v45 = vpop.eup %1785  ;;  %v1067_v43 = vmul.f32 1.442695, %v989_v46  ;;  %v1069_v40 = vmul.f32 1.442695, %v990_v36  ;;  %1177 = vadd.xlane.f32.xlu0 %v1176_v44 }
 0x4ef   : > { %v2452_v26 = vpop.eup %1787  ;;  %v905_v27 = vpop.xlane.xlu1 %904 }
 0x4f0   : > { %1797 = vpow2.f32 %v1067_v43  ;;  %v991_v38 = vsub.f32 %v2262_v50, %v905_v27  ;;  %v992_v6 = vsub.f32 %v2264_v51, %v905_v27  ;;  %v1179_v47 = vadd.f32 %v2452_v26, %v2450_v45 }
 0x4f1   : > { %1799 = vpow2.f32 %v1069_v40 }
 0x4f2   : > { %v2458_v48 = vpop.eup %1789  ;;  %v1071_v24 = vmul.f32 1.442695, %v991_v38  ;;  %v1073_v61 = vmul.f32 1.442695, %v992_v6  ;;  %1180 = vadd.xlane.f32.xlu0 %v1179_v47  ;;  %v2854_v38 = vmax.f32 %v2388_v49, %v2390_v58 }
 0x4f3   : > { %v2460_v30 = vpop.eup %1791  ;;  %v908_v55 = vpop.xlane.xlu0 %907 }
 0x4f4   : > { %1801 = vpow2.f32 %v1071_v24  ;;  %v993_v41 = vsub.f32 %v2268_v53, %v908_v55  ;;  %v994_v52 = vsub.f32 %v2270_v54, %v908_v55  ;;  %v1182_v50 = vadd.f32 %v2460_v30, %v2458_v48 }
 0x4f5   : > { %1803 = vpow2.f32 %v1073_v61 }
 0x4f6   : > { %v2466_v51 = vpop.eup %1793  ;;  %v1075_v3 = vmul.f32 1.442695, %v993_v41  ;;  %v1077_v34 = vmul.f32 1.442695, %v994_v52  ;;  %1183 = vadd.xlane.f32.xlu0 %v1182_v50  ;;  %v2855_v52 = vmax.f32 %v2394_v12, %v2396_v9 }
 0x4f7   : > { %v2468_v46 = vpop.eup %1795  ;;  %v911_v36 = vpop.xlane.xlu0 %910 }
 0x4f8   : > { %1805 = vpow2.f32 %v1075_v3  ;;  %v995_v44 = vsub.f32 %v2274_v56, %v911_v36  ;;  %v996_v43 = vsub.f32 %v2276_v57, %v911_v36  ;;  %v1185_v53 = vadd.f32 %v2468_v46, %v2466_v51 }
 0x4f9   : > { %1807 = vpow2.f32 %v1077_v34 }
 0x4fa   : > { %v2474_v54 = vpop.eup %1797  ;;  %v1079_v40 = vmul.f32 1.442695, %v995_v44  ;;  %v1081_v27 = vmul.f32 1.442695, %v996_v43  ;;  %1186 = vadd.xlane.f32.xlu1 %v1185_v53  ;;  %967 = vmax.xlane.f32.xlu0 %v2854_v38  ;;  %v2856_v53 = vmax.f32 %v2400_v18, %v2402_v15 }
 0x4fb   : > { %v2479_v6 = vpop.eup %1799  ;;  %v914_v47 = vpop.xlane.xlu0 %913 }
 0x4fc   : > { %1809 = vpow2.f32 %v1079_v40  ;;  %v997_v56 = vsub.f32 %v2280_v59, %v914_v47  ;;  %v998_v57 = vsub.f32 %v2282_v60, %v914_v47  ;;  %v1188_v24 = vadd.f32 %v2479_v6, %v2474_v54 }
 0x4fd   : > { %1811 = vpow2.f32 %v1081_v27 }
 0x4fe   : > { %v2485_v61 = vpop.eup %1801  ;;  %v1083_v55 = vmul.f32 1.442695, %v997_v56  ;;  %v1085_v41 = vmul.f32 1.442695, %v998_v57  ;;  %1189 = vadd.xlane.f32.xlu0 %v1188_v24  ;;  %970 = vmax.xlane.f32.xlu1 %v2855_v52 }
 0x4ff   : > { %v2490_v50 = vpop.eup %1803  ;;  %v917_v3 = vpop.xlane.xlu0 %916 }
 0x500   : > { %1813 = vpow2.f32 %v1083_v55  ;;  %v999_v59 = vsub.f32 %v2286_v62, %v917_v3  ;;  %v1000_v60 = vsub.f32 %v2288_v63, %v917_v3  ;;  %v1191_v34 = vadd.f32 %v2490_v50, %v2485_v61 }
 0x501   : > { %1815 = vpow2.f32 %v1085_v41 }
 0x502   : > { %v2496_v36 = vpop.eup %1805  ;;  %v1087_v44 = vmul.f32 1.442695, %v999_v59  ;;  %v1089_v43 = vmul.f32 1.442695, %v1000_v60  ;;  %1192 = vadd.xlane.f32.xlu1 %v1191_v34  ;;  %973 = vmax.xlane.f32.xlu0 %v2856_v53 }
 0x503   : > { %v2501_v40 = vpop.eup %1807  ;;  %v920_v27 = vpop.xlane.xlu0 %919 }
 0x504   : > { %1817 = vpow2.f32 %v1087_v44  ;;  %v1001_v62 = vsub.f32 %v2292_v1, %v920_v27  ;;  %v1002_v63 = vsub.f32 %v2294_v2, %v920_v27  ;;  %v1194_v38 = vadd.f32 %v2501_v40, %v2496_v36 }
 0x505   : > { %1819 = vpow2.f32 %v1089_v43 }
 0x506   : > { %v2507_v47 = vpop.eup %1809  ;;  %v1091_v56 = vmul.f32 1.442695, %v1001_v62  ;;  %v1093_v57 = vmul.f32 1.442695, %v1002_v63  ;;  %1195 = vadd.xlane.f32.xlu0 %v1194_v38 }
 0x507   : > { %v2509_v24 = vpop.eup %1811  ;;  %v923_v55 = vpop.xlane.xlu0 %922 }
 0x508   : > { %1821 = vpow2.f32 %v1091_v56  ;;  %v1003_v41 = vsub.f32 %v2298_v4, %v923_v55  ;;  %v1004_v52 = vsub.f32 %v2300_v5, %v923_v55  ;;  %v1197_v1 = vadd.f32 %v2509_v24, %v2507_v47 }
 0x509   : > { %1823 = vpow2.f32 %v1093_v57 }
 0x50a   : > { %v2515_v2 = vpop.eup %1813  ;;  %v1095_v3 = vmul.f32 1.442695, %v1003_v41  ;;  %v1097_v59 = vmul.f32 1.442695, %v1004_v52  ;;  %1198 = vadd.xlane.f32.xlu1 %v1197_v1 }
 0x50b   : > { %v2517_v60 = vpop.eup %1815  ;;  %v926_v34 = vpop.xlane.xlu0 %925 }
 0x50c   : > { %1825 = vpow2.f32 %v1095_v3  ;;  %v1005_v44 = vsub.f32 %v2304_v7, %v926_v34  ;;  %v1006_v43 = vsub.f32 %v2306_v8, %v926_v34  ;;  %v1200_v4 = vadd.f32 %v2517_v60, %v2515_v2 }
 0x50d   : > { %1827 = vpow2.f32 %v1097_v59 }
 0x50e   : > { %v2523_v5 = vpop.eup %1817  ;;  %v1099_v53 = vmul.f32 1.442695, %v1005_v44  ;;  %v1101_v27 = vmul.f32 1.442695, %v1006_v43  ;;  %1201 = vadd.xlane.f32.xlu0 %v1200_v4 }
 0x50f   : > { %v2525_v62 = vpop.eup %1819  ;;  %v929_v63 = vpop.xlane.xlu0 %928 }
 0x510   : > { %1829 = vpow2.f32 %v1099_v53  ;;  %v1007_v38 = vsub.f32 %v2310_v10, %v929_v63  ;;  %v1008_v56 = vsub.f32 %v2312_v11, %v929_v63  ;;  %v1203_v7 = vadd.f32 %v2525_v62, %v2523_v5 }
 0x511   : > { %1831 = vpow2.f32 %v1101_v27 }
 0x512   : > { %v2531_v8 = vpop.eup %1821  ;;  %v1103_v57 = vmul.f32 1.442695, %v1007_v38  ;;  %v1105_v55 = vmul.f32 1.442695, %v1008_v56  ;;  %1204 = vadd.xlane.f32.xlu1 %v1203_v7 }
 0x513   : > { %v2533_v41 = vpop.eup %1823  ;;  %v932_v52 = vpop.xlane.xlu0 %931 }
 0x514   : > { %1833 = vpow2.f32 %v1103_v57  ;;  %v1009_v1 = vsub.f32 %v2316_v13, %v932_v52  ;;  %v1010_v3 = vsub.f32 %v2318_v14, %v932_v52  ;;  %v1206_v10 = vadd.f32 %v2533_v41, %v2531_v8 }
 0x515   : > { %1835 = vpow2.f32 %v1105_v55 }
 0x516   : > { %v2539_v11 = vpop.eup %1825  ;;  %v1107_v59 = vmul.f32 1.442695, %v1009_v1  ;;  %v1109_v34 = vmul.f32 1.442695, %v1010_v3  ;;  %1207 = vadd.xlane.f32.xlu0 %v1206_v10 }
 0x517   : > { %v2541_v44 = vpop.eup %1827  ;;  %v935_v43 = vpop.xlane.xlu0 %934 }
 0x518   : > { %1837 = vpow2.f32 %v1107_v59  ;;  %v1011_v4 = vsub.f32 %v2322_v16, %v935_v43  ;;  %v1012_v53 = vsub.f32 %v2324_v17, %v935_v43  ;;  %v1209_v13 = vadd.f32 %v2541_v44, %v2539_v11 }
 0x519   : > { %1839 = vpow2.f32 %v1109_v34 }
 0x51a   : > { %v2547_v14 = vpop.eup %1829  ;;  %v1111_v27 = vmul.f32 1.442695, %v1011_v4  ;;  %v1113_v63 = vmul.f32 1.442695, %v1012_v53  ;;  %1210 = vadd.xlane.f32.xlu1 %v1209_v13 }
 0x51b   : > { %v2549_v38 = vpop.eup %1831  ;;  %v938_v56 = vpop.xlane.xlu0 %937 }
 0x51c   : > { %1841 = vpow2.f32 %v1111_v27  ;;  %v1013_v7 = vsub.f32 %v2328_v19, %v938_v56  ;;  %v1014_v57 = vsub.f32 %v2330_v20, %v938_v56  ;;  %v1212_v16 = vadd.f32 %v2549_v38, %v2547_v14 }
 0x51d   : > { %1843 = vpow2.f32 %v1113_v63 }
 0x51e   : > { %v2555_v17 = vpop.eup %1833  ;;  %v1115_v55 = vmul.f32 1.442695, %v1013_v7  ;;  %v1117_v52 = vmul.f32 1.442695, %v1014_v57  ;;  %1213 = vadd.xlane.f32.xlu0 %v1212_v16 }
 0x51f   : > { %v2557_v1 = vpop.eup %1835  ;;  %v941_v3 = vpop.xlane.xlu0 %940 }
 0x520   : > { %1845 = vpow2.f32 %v1115_v55  ;;  %v1015_v10 = vsub.f32 %v2334_v22, %v941_v3  ;;  %v1016_v59 = vsub.f32 %v2336_v23, %v941_v3  ;;  %v1215_v19 = vadd.f32 %v2557_v1, %v2555_v17 }
 0x521   : > { %1847 = vpow2.f32 %v1117_v52 }
 0x522   : > { %v2563_v20 = vpop.eup %1837  ;;  %v1119_v34 = vmul.f32 1.442695, %v1015_v10  ;;  %v1121_v43 = vmul.f32 1.442695, %v1016_v59  ;;  %1216 = vadd.xlane.f32.xlu1 %v1215_v19  ;;  %v2857_v19 = vld [vmem:[#allocation5_spill] sm:$0xff] }
 0x523   : > { %v2565_v4 = vpop.eup %1839  ;;  %v944_v53 = vpop.xlane.xlu0 %943 }
 0x524   : > { %1849 = vpow2.f32 %v1119_v34  ;;  %v1017_v13 = vsub.f32 %v2340_v25, %v944_v53  ;;  %v1018_v27 = vsub.f32 %v2342_v28, %v944_v53  ;;  %v1218_v22 = vadd.f32 %v2565_v4, %v2563_v20 }
 0x525   : > { %1851 = vpow2.f32 %v1121_v43  ;;  %v2858_v43 = vld [vmem:[#allocation6_spill] sm:$0xff] }
 0x526   : > { %v2571_v23 = vpop.eup %1841  ;;  %v1123_v63 = vmul.f32 1.442695, %v1017_v13  ;;  %v1125_v56 = vmul.f32 1.442695, %v1018_v27  ;;  %1219 = vadd.xlane.f32.xlu0 %v1218_v22 }
 0x527   : > { %v2573_v7 = vpop.eup %1843  ;;  %v947_v57 = vpop.xlane.xlu0 %946 }
 0x528   : > { %1853 = vpow2.f32 %v1123_v63  ;;  %v1019_v16 = vsub.f32 %v2346_v29, %v947_v57  ;;  %v1020_v55 = vsub.f32 %v2348_v37, %v947_v57  ;;  %v1221_v25 = vadd.f32 %v2573_v7, %v2571_v23 }
 0x529   : > { %1855 = vpow2.f32 %v1125_v56  ;;  %v2861_v56 = vld [vmem:[#allocation7_spill] sm:$0xff] }
 0x52a   : > { %v2579_v28 = vpop.eup %1845  ;;  %v1127_v52 = vmul.f32 1.442695, %v1019_v16  ;;  %v1129_v3 = vmul.f32 1.442695, %v1020_v55  ;;  %1222 = vadd.xlane.f32.xlu1 %v1221_v25  ;;  %v2862_v16 = vld [vmem:[#allocation8_spill] sm:$0xff] }
 0x52b   : > { %v2581_v10 = vpop.eup %1847  ;;  %v950_v59 = vpop.xlane.xlu0 %949 }
 0x52c   : > { %1857 = vpow2.f32 %v1127_v52  ;;  %v1021_v34 = vsub.f32 %v2857_v19, %v950_v59  ;;  %v1022_v53 = vsub.f32 %v2858_v43, %v950_v59  ;;  %v1224_v29 = vadd.f32 %v2581_v10, %v2579_v28  ;;  %v2865_v43 = vld [vmem:[#allocation9_spill] sm:$0xff] }
 0x52d   : > { %1859 = vpow2.f32 %v1129_v3 }
 0x52e   : > { %v2587_v37 = vpop.eup %1849  ;;  %v1131_v13 = vmul.f32 1.442695, %v1021_v34  ;;  %v1133_v27 = vmul.f32 1.442695, %v1022_v53  ;;  %1225 = vadd.xlane.f32.xlu0 %v1224_v29  ;;  %v2866_v29 = vld [vmem:[#allocation10_spill] sm:$0xff] }
 0x52f   : > { %2859 = vst [vmem:[#allocation5_spill] sm:$0xff] %v2587_v37  ;;  %v2589_v22 = vpop.eup %1851  ;;  %v953_v63 = vpop.xlane.xlu0 %952 }
 0x530   : > { %2860 = vst [vmem:[#allocation6_spill] sm:$0xff] %v2589_v22  ;;  %1861 = vpow2.f32 %v1131_v13  ;;  %v1023_v57 = vsub.f32 %v2861_v56, %v953_v63  ;;  %v1024_v55 = vsub.f32 %v2862_v16, %v953_v63  ;;  %v1227_v25 = vadd.f32 %v2589_v22, %v2587_v37 }
 0x531   : > { %1863 = vpow2.f32 %v1133_v27 }
 0x532   : > { %v2595_v52 = vpop.eup %1853  ;;  %v1135_v3 = vmul.f32 1.442695, %v1023_v57  ;;  %v1137_v59 = vmul.f32 1.442695, %v1024_v55  ;;  %1228 = vadd.xlane.f32.xlu1 %v1227_v25  ;;  %v2869_v25 = vld [vmem:[#allocation11_spill] sm:$0xff] }
 0x533   : > { %2863 = vst [vmem:[#allocation7_spill] sm:$0xff] %v2595_v52  ;;  %v2597_v19 = vpop.eup %1855  ;;  %v956_v34 = vpop.xlane.xlu0 %955 }
 0x534   : > { %2864 = vst [vmem:[#allocation8_spill] sm:$0xff] %v2597_v19  ;;  %1865 = vpow2.f32 %v1135_v3  ;;  %v1025_v53 = vsub.f32 %v2865_v43, %v956_v34  ;;  %v1026_v13 = vsub.f32 %v2866_v29, %v956_v34  ;;  %v1230_v63 = vadd.f32 %v2597_v19, %v2595_v52  ;;  %v2870_v3 = vld [vmem:[#allocation12_spill] sm:$0xff] }
 0x535   : > { %1867 = vpow2.f32 %v1137_v59 }
 0x536   : > { %v2603_v56 = vpop.eup %1857  ;;  %v1139_v27 = vmul.f32 1.442695, %v1025_v53  ;;  %v1141_v16 = vmul.f32 1.442695, %v1026_v13  ;;  %1231 = vadd.xlane.f32.xlu0 %v1230_v63  ;;  %v2871_v63 = vld [vmem:[#allocation13_spill] sm:$0xff] }
 0x537   : > { %2867 = vst [vmem:[#allocation9_spill] sm:$0xff] %v2603_v56  ;;  %v2605_v57 = vpop.eup %1859  ;;  %v959_v55 = vpop.xlane.xlu0 %958 }
 0x538   : > { %2868 = vst [vmem:[#allocation10_spill] sm:$0xff] %v2605_v57  ;;  %1869 = vpow2.f32 %v1139_v27  ;;  %v1027_v37 = vsub.f32 %v2869_v25, %v959_v55  ;;  %v1028_v22 = vsub.f32 %v2870_v3, %v959_v55  ;;  %v1233_v34 = vadd.f32 %v2605_v57, %v2603_v56  ;;  %v2872_v27 = vld [vmem:[#allocation14_spill] sm:$0xff] }
 0x539   : > { %1871 = vpow2.f32 %v1141_v16 }
 0x53a   : > { %v2611_v43 = vpop.eup %1861  ;;  %v1143_v59 = vmul.f32 1.442695, %v1027_v37  ;;  %v1145_v29 = vmul.f32 1.442695, %v1028_v22  ;;  %1234 = vadd.xlane.f32.xlu1 %v1233_v34  ;;  %v2874_v34 = vld [vmem:[#allocation15_spill] sm:$0xff] }
 0x53b   : > { %v2613_v53 = vpop.eup %1863  ;;  %v962_v13 = vpop.xlane.xlu0 %961 }
 0x53c   : > { %1873 = vpow2.f32 %v1143_v59  ;;  %v1029_v52 = vsub.f32 %v2871_v63, %v962_v13  ;;  %v1030_v19 = vsub.f32 %v2872_v27, %v962_v13  ;;  %v1236_v55 = vadd.f32 %v2613_v53, %v2611_v43  ;;  %v2875_v59 = vld [vmem:[#allocation16_spill] sm:$0xff] }
 0x53d   : > { %1875 = vpow2.f32 %v1145_v29 }
 0x53e   : > { %v2619_v25 = vpop.eup %1865  ;;  %v1147_v16 = vmul.f32 1.442695, %v1029_v52  ;;  %v1149_v3 = vmul.f32 1.442695, %v1030_v19  ;;  %1237 = vadd.xlane.f32.xlu0 %v1236_v55 }
 0x53f   : > { %2873 = vst [vmem:[#allocation11_spill] sm:$0xff] %v2619_v25  ;;  %v2621_v37 = vpop.eup %1867  ;;  %v965_v22 = vpop.xlane.xlu1 %964 }
 0x540   : > { %1877 = vpow2.f32 %v1147_v16  ;;  %v1031_v56 = vsub.f32 %v2874_v34, %v965_v22  ;;  %v1032_v57 = vsub.f32 %v2875_v59, %v965_v22  ;;  %v1239_v13 = vadd.f32 %v2621_v37, %v2619_v25 }
 0x541   : > { %1879 = vpow2.f32 %v1149_v3 }
 0x542   : > { %v2627_v63 = vpop.eup %1869  ;;  %v1151_v29 = vmul.f32 1.442695, %v1031_v56  ;;  %v1153_v27 = vmul.f32 1.442695, %v1032_v57  ;;  %1240 = vadd.xlane.f32.xlu1 %v1239_v13 }
 0x543   : > { %2876 = vst [vmem:[#allocation12_spill] sm:$0xff] %v2627_v63  ;;  %v2629_v52 = vpop.eup %1871 }
 0x544   : > { %2877 = vst [vmem:[#allocation13_spill] sm:$0xff] %v2629_v52  ;;  %1881 = vpow2.f32 %v1151_v29  ;;  %v1242_v19 = vadd.f32 %v2629_v52, %v2627_v63 }
 0x545   : > { %1883 = vpow2.f32 %v1153_v27 }
 0x546   : > { %v2633_v55 = vpop.eup %1873  ;;  %1243 = vadd.xlane.f32.xlu0 %v1242_v19 }
 0x547   : > { %2878 = vst [vmem:[#allocation14_spill] sm:$0xff] %v2633_v55  ;;  %v2635_v16 = vpop.eup %1875 }
 0x548   : > { %2879 = vst [vmem:[#allocation15_spill] sm:$0xff] %v2635_v16  ;;  %v1245_v3 = vadd.f32 %v2635_v16, %v2633_v55 }
 0x54a   : > { %v2639_v22 = vpop.eup %1877  ;;  %1246 = vadd.xlane.f32.xlu1 %v1245_v3 }
 0x54b   : > { %2880 = vst [vmem:[#allocation16_spill] sm:$0xff] %v2639_v22  ;;  %v2641_v56 = vpop.eup %1879 }
 0x54c   : > { %2881 = vst [vmem:[#allocation17_spill] sm:$0xff] %v2641_v56  ;;  %v1248_v57 = vadd.f32 %v2641_v56, %v2639_v22 }
 0x54e   : > { %v2645_v34 = vpop.eup %1881  ;;  %1249 = vadd.xlane.f32.xlu0 %v1248_v57 }
 0x54f   : > { %2882 = vst [vmem:[#allocation18_spill] sm:$0xff] %v2645_v34  ;;  %v2647_v59 = vpop.eup %1883 }
 0x550   : > { %2883 = vst [vmem:[#allocation19_spill] sm:$0xff] %v2647_v59  ;;  %v1251_v13 = vadd.f32 %v2647_v59, %v2645_v34 }
 0x552   : > { %1252 = vadd.xlane.f32.xlu1 %v1251_v13 }
 0x56f   : > { %v1169_v29 = vpop.xlane.xlu0 %1168 }
 0x570   : > { %1885 = vrcp.f32 %v1169_v29 }
 0x573   : > { %v1172_v27 = vpop.xlane.xlu0 %1171 }
 0x574   : > { %1887 = vrcp.f32 %v1172_v27 }
 0x577   : > { %v1175_v19 = vpop.xlane.xlu0 %1174 }
 0x578   : > { %1889 = vrcp.f32 %v1175_v19 }
 0x57a   : > { %v1886_v55 = vpop.eup %1885 }
 0x57b   : > { %v1178_v3 = vpop.xlane.xlu0 %1177  ;;  %v1265_v56 = vmul.f32 %v1886_v55, %v2420_v0  ;;  %v1264_v25 = vmul.f32 %v1886_v55, %v2418_v31 }
 0x57c   : > { %1891 = vrcp.f32 %v1178_v3 }
 0x57e   : > { %v1888_v16 = vpop.eup %1887 }
 0x57f   : > { %v1181_v22 = vpop.xlane.xlu0 %1180  ;;  %v1268_v57 = vmul.f32 %v1888_v16, %v2428_v21  ;;  %v1267_v34 = vmul.f32 %v1888_v16, %v2426_v35 }
 0x580   : > { %1893 = vrcp.f32 %v1181_v22 }
 0x581   : > { %v1652_v13 = vpack.c.bf16 %v1268_v57, %v1265_v56  ;;  %v1654_v59 = vpack.c.bf16 %v1267_v34, %v1264_v25 }
 0x582   : > { %v1890_v27 = vpop.eup %1889 }
 0x583   : > { %1653 = vmatprep.subr.bf16.mxu0 %v1652_v13  ;;  %v1184_v29 = vpop.xlane.xlu0 %1183  ;;  %v1271_v52 = vmul.f32 %v1890_v27, %v2436_v32  ;;  %v1270_v21 = vmul.f32 %v1890_v27, %v2434_v39 }
 0x584   : > { %1895 = vrcp.f32 %v1184_v29  ;;  %1655 = vmatpush1.bf16.xpose.msra.mxu0 %v1654_v59 }
 0x586   : > { %v1892_v19 = vpop.eup %1891 }
 0x587   : > { %v1187_v3 = vpop.xlane.xlu1 %1186  ;;  %v968_v63 = vpop.xlane.xlu0 %967  ;;  %v1274_v0 = vmul.f32 %v1892_v19, %v2444_v33  ;;  %v1273_v31 = vmul.f32 %v1892_v19, %v2442_v42 }
 0x588   : > { %v1033_v35 = vsub.f32 %v2388_v49, %v968_v63  ;;  %v1034_v25 = vsub.f32 %v2390_v58, %v968_v63  ;;  %1897 = vrcp.f32 %v1187_v3 }
 0x589   : > { %v1656_v55 = vpack.c.bf16 %v1274_v0, %v1271_v52  ;;  %v1658_v16 = vpack.c.bf16 %v1273_v31, %v1270_v21 }
 0x58a   : > { %v1155_v22 = vmul.f32 1.442695, %v1033_v35  ;;  %v1157_v56 = vmul.f32 1.442695, %v1034_v25  ;;  %v1894_v57 = vpop.eup %1893 }
 0x58b   : > { %1657 = vmatprep.subr.bf16.mxu0 %v1656_v55  ;;  %v1190_v34 = vpop.xlane.xlu0 %1189  ;;  %v971_v59 = vpop.xlane.xlu1 %970  ;;  %v1277_v63 = vmul.f32 %v1894_v57, %v2452_v26  ;;  %v1276_v13 = vmul.f32 %v1894_v57, %v2450_v45 }
 0x58c   : > { %1899 = vpow2.f32 %v1155_v22  ;;  %v1035_v32 = vsub.f32 %v2394_v12, %v971_v59  ;;  %v1036_v39 = vsub.f32 %v2396_v9, %v971_v59  ;;  %1659 = vmatpush1.bf16.xpose.msra.mxu0 %v1658_v16 }
 0x58d   : > { %1901 = vpow2.f32 %v1157_v56 }
 0x58e   : > { %v1896_v42 = vpop.eup %1895  ;;  %1903 = vrcp.f32 %v1190_v34  ;;  %v1159_v49 = vmul.f32 1.442695, %v1035_v32  ;;  %v1161_v58 = vmul.f32 1.442695, %v1036_v39 }
 0x58f   : > { %v974_v33 = vpop.xlane.xlu0 %973  ;;  %v1280_v52 = vmul.f32 %v1896_v42, %v2460_v30  ;;  %v1279_v29 = vmul.f32 %v1896_v42, %v2458_v48  ;;  %v1193_v27 = vpop.xlane.xlu1 %1192 }
 0x590   : > { %1905 = vpow2.f32 %v1159_v49  ;;  %v1037_v12 = vsub.f32 %v2400_v18, %v974_v33  ;;  %v1038_v9 = vsub.f32 %v2402_v15, %v974_v33 }
 0x591   : > { %1907 = vpow2.f32 %v1161_v58  ;;  %v1660_v19 = vpack.c.bf16 %v1280_v52, %v1277_v63  ;;  %v1662_v3 = vpack.c.bf16 %v1279_v29, %v1276_v13 }
 0x592   : > { %v1163_v0 = vmul.f32 1.442695, %v1037_v12  ;;  %v1165_v21 = vmul.f32 1.442695, %v1038_v9  ;;  %1909 = vrcp.f32 %v1193_v27  ;;  %v1898_v30 = vpop.eup %1897 }
 0x593   : > { %1661 = vmatprep.subr.bf16.mxu0 %v1660_v19  ;;  %v1196_v26 = vpop.xlane.xlu0 %1195  ;;  %v1283_v35 = vmul.f32 %v1898_v30, %v2468_v46  ;;  %v1282_v55 = vmul.f32 %v1898_v30, %v2466_v51  ;;  %v2702_v30 = vpop.f32.mrb[2].mxu0 }
 0x594   : > { %1911 = vpow2.f32 %v1163_v0  ;;  %1663 = vmatpush1.bf16.xpose.msra.mxu0 %v1662_v3 }
 0x595   : > { %1913 = vpow2.f32 %v1165_v21 }
 0x596   : > { %v2669_v45 = vpop.eup %1899  ;;  %1915 = vrcp.f32 %v1196_v26  ;;  %v351_v26 = vld [vmem:[%s2809_s4 + $0x8] sm:$0xf] }
 0x597   : > { %v2671_v48 = vpop.eup %1901  ;;  %v1199_v18 = vpop.xlane.xlu1 %1198 }
 0x598   : > { %v1904_v31 = vpop.eup %1903  ;;  %v1254_v15 = vadd.f32 %v2671_v48, %v2669_v45  ;;  %1917 = vrcp.f32 %v1199_v18 }
 0x599   : > { %v1286_v25 = vmul.f32 %v1904_v31, %v2479_v6  ;;  %v1285_v16 = vmul.f32 %v1904_v31, %v2474_v54 }
 0x59a   : > { %v2679_v22 = vpop.eup %1905  ;;  %1255 = vadd.xlane.f32.xlu0 %v1254_v15 }
 0x59b   : > { %v2681_v56 = vpop.eup %1907  ;;  %v1664_v34 = vpack.c.bf16 %v1286_v25, %v1283_v35  ;;  %v1202_v59 = vpop.xlane.xlu0 %1201  ;;  %v1666_v57 = vpack.c.bf16 %v1285_v16, %v1282_v55 }
 0x59c   : > { %1919 = vrcp.f32 %v1202_v59  ;;  %v1257_v32 = vadd.f32 %v2681_v56, %v2679_v22  ;;  %v1910_v46 = vpop.eup %1909 }
 0x59d   : > { %1665 = vmatprep.subr.bf16.mxu0 %v1664_v34  ;;  %v1289_v49 = vmul.f32 %v1910_v46, %v2490_v50  ;;  %v1288_v33 = vmul.f32 %v1910_v46, %v2485_v61  ;;  %v1431_v34 = vld [vmem:[%s2811_s6] sm:$0xf] }
 0x59e   : > { %v2685_v6 = vpop.eup %1911  ;;  %1667 = vmatpush1.bf16.xpose.msra.mxu0 %v1666_v57  ;;  %1258 = vadd.xlane.f32.xlu1 %v1257_v32 }
 0x59f   : > { %v2687_v51 = vpop.eup %1913  ;;  %v1205_v54 = vpop.xlane.xlu1 %1204 }
 0x5a0   : > { %v1916_v39 = vpop.eup %1915  ;;  %v1260_v42 = vadd.f32 %v2687_v51, %v2685_v6  ;;  %1921 = vrcp.f32 %v1205_v54 }
 0x5a1   : > { %v1292_v58 = vmul.f32 %v1916_v39, %v2501_v40  ;;  %v1291_v63 = vmul.f32 %v1916_v39, %v2496_v36 }
 0x5a2   : > { %1261 = vadd.xlane.f32.xlu0 %v1260_v42  ;;  %v1918_v27 = vpop.eup %1917 }
 0x5a3   : > { %v1668_v52 = vpack.c.bf16 %v1292_v58, %v1289_v49  ;;  %v1208_v13 = vpop.xlane.xlu0 %1207  ;;  %v1670_v29 = vpack.c.bf16 %v1291_v63, %v1288_v33  ;;  %v1295_v19 = vmul.f32 %v1918_v27, %v2509_v24  ;;  %v1294_v61 = vmul.f32 %v1918_v27, %v2507_v47  ;;  %v2704_v24 = vpop.f32.mrb[3].mxu0 }
 0x5a4   : > { %1923 = vrcp.f32 %v1208_v13 }
 0x5a5   : > { %1669 = vmatprep.subr.bf16.mxu0 %v1668_v52 }
 0x5a6   : > { %v1920_v12 = vpop.eup %1919  ;;  %1671 = vmatpush1.bf16.xpose.msra.mxu0 %v1670_v29 }
 0x5a7   : > { %v1211_v9 = vpop.xlane.xlu1 %1210  ;;  %v1298_v50 = vmul.f32 %v1920_v12, %v2517_v60  ;;  %v1297_v40 = vmul.f32 %v1920_v12, %v2515_v2 }
 0x5a8   : > { %1925 = vrcp.f32 %v1211_v9 }
 0x5a9   : > { %v1672_v36 = vpack.c.bf16 %v1298_v50, %v1295_v19  ;;  %v1674_v3 = vpack.c.bf16 %v1297_v40, %v1294_v61  ;;  %v2884_v61 = vld [vmem:[#allocation6_spill] sm:$0xff] }
 0x5aa   : > { %v1922_v21 = vpop.eup %1921 }
 0x5ab   : > { %1673 = vmatprep.subr.bf16.mxu0 %v1672_v36  ;;  %v1214_v0 = vpop.xlane.xlu0 %1213  ;;  %v1301_v47 = vmul.f32 %v1922_v21, %v2525_v62  ;;  %v1300_v15 = vmul.f32 %v1922_v21, %v2523_v5  ;;  %v2887_v21 = vld [vmem:[#allocation5_spill] sm:$0xff] }
 0x5ac   : > { %1927 = vrcp.f32 %v1214_v0  ;;  %v2886_v0 = vld [vmem:[#allocation7_spill] sm:$0xff] }
 0x5ae   : > { %v1924_v60 = vpop.eup %1923  ;;  %1675 = vmatpush1.bf16.xpose.msra.mxu0 %v1674_v3  ;;  %v2885_v3 = vld [vmem:[#allocation8_spill] sm:$0xff] }
 0x5af   : > { %359 = vperm.xlu1 %1764, %v351_v26   ;;  %v1217_v2 = vpop.xlane.xlu1 %1216  ;;  %v1304_v18 = vmul.f32 %v1924_v60, %v2533_v41  ;;  %v1303_v31 = vmul.f32 %v1924_v60, %v2531_v8 }
 0x5b0   : > { %1929 = vrcp.f32 %v1217_v2 }
 0x5b1   : > { %v1676_v35 = vpack.c.bf16 %v1304_v18, %v1301_v47  ;;  %v1678_v25 = vpack.c.bf16 %v1303_v31, %v1300_v15  ;;  %v2888_v31 = vld [vmem:[#allocation10_spill] sm:$0xff] }
 0x5b2   : > { %v1926_v16 = vpop.eup %1925 }
 0x5b3   : > { %1677 = vmatprep.subr.bf16.mxu0 %v1676_v35  ;;  %v1220_v55 = vpop.xlane.xlu0 %1219  ;;  %v1307_v41 = vmul.f32 %v1926_v16, %v2541_v44  ;;  %v1306_v57 = vmul.f32 %v1926_v16, %v2539_v11 }
 0x5b4   : > { %1931 = vrcp.f32 %v1220_v55  ;;  %v2889_v55 = vld [vmem:[#allocation9_spill] sm:$0xff] }
 0x5b6   : > { %v1928_v59 = vpop.eup %1927  ;;  %1679 = vmatpush1.bf16.xpose.msra.mxu0 %v1678_v25 }
 0x5b7   : > { %v1223_v62 = vpop.xlane.xlu1 %1222  ;;  %v1310_v8 = vmul.f32 %v1928_v59, %v2549_v38  ;;  %v1309_v5 = vmul.f32 %v1928_v59, %v2547_v14 }
 0x5b8   : > { %1434 = vperm.xlu0 %1765, %v1431_v34   ;;  %1933 = vrcp.f32 %v1223_v62 }
 0x5b9   : > { %v1680_v32 = vpack.c.bf16 %v1310_v8, %v1307_v41  ;;  %v1682_v46 = vpack.c.bf16 %v1309_v5, %v1306_v57  ;;  %v2890_v57 = vld [vmem:[#allocation13_spill] sm:$0xff] }
 0x5ba   : > { %v1930_v39 = vpop.eup %1929 }
 0x5bb   : > { %1681 = vmatprep.subr.bf16.mxu0 %v1680_v32  ;;  %v1226_v54 = vpop.xlane.xlu0 %1225  ;;  %v1313_v58 = vmul.f32 %v1930_v39, %v2557_v1  ;;  %v1312_v14 = vmul.f32 %v1930_v39, %v2555_v17 }
 0x5bc   : > { %1935 = vrcp.f32 %v1226_v54 }
 0x5be   : > { %v1932_v42 = vpop.eup %1931  ;;  %1683 = vmatpush1.bf16.xpose.msra.mxu0 %v1682_v46  ;;  %v2891_v46 = vld [vmem:[#allocation12_spill] sm:$0xff] }
 0x5bf   : > { %v1229_v49 = vpop.xlane.xlu1 %1228  ;;  %v1316_v44 = vmul.f32 %v1932_v42, %v2565_v4  ;;  %v1315_v38 = vmul.f32 %v1932_v42, %v2563_v20 }
 0x5c0   : > { %1937 = vrcp.f32 %v1229_v49 }
 0x5c1   : > { %v1684_v33 = vpack.c.bf16 %v1316_v44, %v1313_v58  ;;  %v1686_v11 = vpack.c.bf16 %v1315_v38, %v1312_v14  ;;  %v2893_v44 = vld [vmem:[#allocation15_spill] sm:$0xff]  ;;  %v2894_v14 = vld [vmem:[#allocation17_spill] sm:$0xff] }
 0x5c2   : > { %v1934_v52 = vpop.eup %1933 }
 0x5c3   : > { %1685 = vmatprep.subr.bf16.mxu0 %v1684_v33  ;;  %v1232_v63 = vpop.xlane.xlu0 %1231  ;;  %v1319_v27 = vmul.f32 %v1934_v52, %v2573_v7  ;;  %v1318_v20 = vmul.f32 %v1934_v52, %v2571_v23  ;;  %v2896_v52 = vld [vmem:[#allocation14_spill] sm:$0xff] }
 0x5c4   : > { %1939 = vrcp.f32 %v1232_v63 }
 0x5c6   : > { %v1936_v13 = vpop.eup %1935  ;;  %1687 = vmatpush1.bf16.xpose.msra.mxu0 %v1686_v11  ;;  %v2895_v11 = vld [vmem:[#allocation16_spill] sm:$0xff] }
 0x5c7   : > { %v1235_v29 = vpop.xlane.xlu1 %1234  ;;  %v1322_v1 = vmul.f32 %v1936_v13, %v2581_v10  ;;  %v1321_v4 = vmul.f32 %v1936_v13, %v2579_v28 }
 0x5c8   : > { %1941 = vrcp.f32 %v1235_v29 }
 0x5c9   : > { %v1688_v12 = vpack.c.bf16 %v1322_v1, %v1319_v27  ;;  %v1690_v17 = vpack.c.bf16 %v1321_v4, %v1318_v20 }
 0x5ca   : > { %v1938_v19 = vpop.eup %1937 }
 0x5cb   : > { %1689 = vmatprep.subr.bf16.mxu0 %v1688_v12  ;;  %v1238_v9 = vpop.xlane.xlu0 %1237  ;;  %v1325_v36 = vmul.f32 %v1938_v19, %v2884_v61  ;;  %v1324_v28 = vmul.f32 %v1938_v19, %v2887_v21 }
 0x5cc   : > { %1943 = vrcp.f32 %v1238_v9 }
 0x5ce   : > { %v1940_v50 = vpop.eup %1939  ;;  %1691 = vmatpush1.bf16.xpose.msra.mxu0 %v1690_v17 }
 0x5cf   : > { %v1241_v40 = vpop.xlane.xlu1 %1240  ;;  %v1328_v7 = vmul.f32 %v1940_v50, %v2885_v3  ;;  %v1327_v10 = vmul.f32 %v1940_v50, %v2886_v0  ;;  %v2897_v50 = vld [vmem:[#allocation19_spill] sm:$0xff] }
 0x5d0   : > { %1945 = vrcp.f32 %v1241_v40 }
 0x5d1   : > { %v1692_v26 = vpack.c.bf16 %v1328_v7, %v1325_v36  ;;  %v1694_v23 = vpack.c.bf16 %v1327_v10, %v1324_v28  ;;  %v2898_v36 = vld [vmem:[#allocation18_spill] sm:$0xff] }
 0x5d2   : > { %v1942_v2 = vpop.eup %1941 }
 0x5d3   : > { %1693 = vmatprep.subr.bf16.mxu0 %v1692_v26  ;;  %v1244_v60 = vpop.xlane.xlu0 %1243  ;;  %v1331_v15 = vmul.f32 %v1942_v2, %v2888_v31  ;;  %v1330_v16 = vmul.f32 %v1942_v2, %v2889_v55 }
 0x5d4   : > { %1947 = vrcp.f32 %v1244_v60 }
 0x5d6   : > { %v1944_v47 = vpop.eup %1943  ;;  %1695 = vmatpush1.bf16.xpose.msra.mxu0 %v1694_v23 }
 0x5d7   : > { %v1247_v18 = vpop.xlane.xlu1 %1246  ;;  %v1334_v35 = vmul.f32 %v1944_v47, %v2613_v53  ;;  %v1333_v25 = vmul.f32 %v1944_v47, %v2611_v43  ;;  %v2892_v53 = vld [vmem:[#allocation11_spill] sm:$0xff] }
 0x5d8   : > { %1949 = vrcp.f32 %v1247_v18 }
 0x5d9   : > { %v1696_v34 = vpack.c.bf16 %v1334_v35, %v1331_v15  ;;  %v1698_v59 = vpack.c.bf16 %v1333_v25, %v1330_v16  ;;  %v1961_v35 = vld [vmem:[%s2123_s17] sm:$0xff]  ;;  %s1966_s17 = sshll.u32 %s2029_s28, 4  ;;  %s1967_s17 = int_to_ptr.vmem [resolvable:$false] %s1966_s17 }
 0x5da   : > { %v1946_v41 = vpop.eup %1945  ;;  %s1968_s29 = scalar_lea.vmem %s1967_s17, 256  ;;  %p1969_p0 = scmp.lt.s32.totalorder %s2765_s18, %s1967_s17 }
 0x5db   : > { %1697 = vmatprep.subr.bf16.mxu0 %v1696_v34  ;;  %v1250_v62 = vpop.xlane.xlu0 %1249  ;;  %v1337_v5 = vmul.f32 %v1946_v41, %v2621_v37  ;;  %v1336_v39 = vmul.f32 %v1946_v41, %v2892_v53  ;;  %p1970_p1 = scmp.lt.s32.totalorder %s1968_s29, %s1962_s23 }
 0x5dc   : > { %1951 = vrcp.f32 %v1250_v62 }
 0x5dd   : > { %p1971_p2 = por %p1970_p1, %p1969_p0 }
 0x5de   : > { %v1948_v8 = vpop.eup %1947  ;;  %1699 = vmatpush1.bf16.xpose.msra.mxu0 %v1698_v59 }
 0x5df   : > { %v1340_v32 = vmul.f32 %v1948_v8, %v2890_v57  ;;  %v1339_v54 = vmul.f32 %v1948_v8, %v2891_v46  ;;  %v1253_v27 = vpop.xlane.xlu1 %1252  ;;  %p1972_p3 = pnand %p1971_p2, %p1965_p13 }
 0x5e0   : > { %1953 = vrcp.f32 %v1253_v27 }
 0x5e1   : > { %v1700_v43 = vpack.c.bf16 %v1340_v32, %v1337_v5  ;;  %v1702_v42 = vpack.c.bf16 %v1339_v54, %v1336_v39 }
 0x5e2   : > { %v1950_v49 = vpop.eup %1949 }
 0x5e3   : > { %1701 = vmatprep.subr.bf16.mxu0 %v1700_v43  ;;  %v1343_v38 = vmul.f32 %v1950_v49, %v2893_v44  ;;  %v1342_v37 = vmul.f32 %v1950_v49, %v2896_v52 }
 0x5e6   : > { %v1952_v58 = vpop.eup %1951  ;;  %1703 = vmatpush1.bf16.xpose.msra.mxu0 %v1702_v42 }
 0x5e7   : > { %v1346_v33 = vmul.f32 %v1952_v58, %v2894_v14  ;;  %v1345_v63 = vmul.f32 %v1952_v58, %v2895_v11 }
 0x5e9   : > { %v1704_v13 = vpack.c.bf16 %v1346_v33, %v1343_v38  ;;  %v1706_v29 = vpack.c.bf16 %v1345_v63, %v1342_v37 }
 0x5ea   : > { %v1954_v17 = vpop.eup %1953 }
 0x5eb   : > { %1705 = vmatprep.subr.bf16.mxu0 %v1704_v13  ;;  %v1349_v40 = vmul.f32 %v1954_v17, %v2897_v50  ;;  %v1348_v3 = vmul.f32 %v1954_v17, %v2898_v36 }
 0x5ee   : > { %1707 = vmatpush1.bf16.xpose.msra.mxu0 %v1706_v29 }
 0x627   : > { %v1256_v1 = vpop.xlane.xlu0 %1255 }
 0x628   : > { %1955 = vrcp.f32 %v1256_v1 }
 0x62b   : > { %v1259_v4 = vpop.xlane.xlu1 %1258 }
 0x62c   : > { %1957 = vrcp.f32 %v1259_v4 }
 0x62f   : > { %v360_v20 = vpop.permute.xlu1 %359  ;;  %v1262_v12 = vpop.xlane.xlu0 %1261 }
 0x630   : > { %v450_v9 = vadd.f32 %v2704_v24, %v360_v20  ;;  %1959 = vrcp.f32 %v1262_v12 }
 0x632   : > { %v1956_v19 = vpop.eup %1955  ;;  %1423 = vmatprep.mubr.f32.mxu0 %v450_v9 }
 0x633   : > { %v1352_v61 = vmul.f32 %v1956_v19, %v2671_v48  ;;  %v1351_v7 = vmul.f32 %v1956_v19, %v2669_v45  ;;  %v448_v45 = vadd.f32 %v2702_v30, %v360_v20 }
 0x635   : > { %v1708_v0 = vpack.c.bf16 %v1352_v61, %v1349_v40  ;;  %v1710_v10 = vpack.c.bf16 %v1351_v7, %v1348_v3 }
 0x636   : > { %v1958_v21 = vpop.eup %1957 }
 0x637   : > { %1709 = vmatprep.subr.bf16.mxu0 %v1708_v0  ;;  %v1355_v26 = vmul.f32 %v1958_v21, %v2681_v56  ;;  %v1354_v23 = vmul.f32 %v1958_v21, %v2679_v22  ;;  %v1430_v56 = vld [vmem:[%s2810_s5] sm:$0xf]  ;;  %v1435_v22 = vpop.permute.xlu0 %1434 }
 0x638   : > { %1711 = vmatpush1.bf16.xpose.msra.mxu0 %v1710_v10 }
 0x63a   : > { %v1960_v28 = vpop.eup %1959 }
 0x63b   : > { %v1358_v24 = vmul.f32 %v1960_v28, %v2687_v51  ;;  %v1357_v60 = vmul.f32 %v1960_v28, %v2685_v6 }
 0x63d   : > { %v1712_v48 = vpack.c.bf16 %v1358_v24, %v1355_v26  ;;  %v1714_v2 = vpack.c.bf16 %v1357_v60, %v1354_v23 }
 0x63f   : > { %1713 = vmatprep.subr.bf16.mxu0 %v1712_v48 }
 0x640   : > { %1715 = vmatpush1.bf16.xpose.msra.mxu0 %v1714_v2 }
 0x647   : > { %1424 = vmatmul.mubr.f32.vlgmr.msra.gmra.mrb[4].mxu0 %v448_v45 }
 0x71a   : > { %v1425_v47 = vpop.f32.mrb[4].mxu0 }
 0x71b   : > { %v1427_v18 = vpop.f32.mrb[5].mxu0 }
 0x71c   : > { %1642 = vmatprep.subr.msk.mxu1 %vm281_vm0, %v1427_v18 }
 0x71d   : > { %1643 = vmatpush1.msk.msra.mxu1 %vm281_vm0, %v1425_v47 }
 0x71e   : > { %1644 = vmatmul.mubr.msk.f32.vlgmr.msra.gmra.mrb[64].mxu1 %vm364_vm1, %v1430_v56 }
 0x7f1   : > { %v1512_v6 = vpop.f32.mrb[64].mxu1 }
 0x7f2   : > { %v1513_v51 = vadd.f32 %v1512_v6, %v1435_v22  ;;  %v1514_v30 = vpop.f32.mrb[65].mxu1 }
 0x7f3   : > { %v1515_v31 = vadd.f32 %v1514_v30, %v1435_v22 }
 0x7f5   : > { %v1519_v15 = vcombine.low %v1513_v51, %v1515_v31 }
 0x7f7   : > { %v1521_v25 = vadd.f32 %v1961_v35, %v1519_v15 }
 0x7f9   : > { %1522 = vst [vmem:[%s271_s16] sm:$0xff] %v1521_v25 }
 0x7fa   : > { %1975 = shalt.err (!%p1972_p3)
}
 0x7fb   : > { %s1976_s8 = scalar_lea.hbm %s2763_s21, 128  ;;  %s1980_s14 = scalar_lea.hbm %s2812_s7, 256 }
 0x7fc   : > { %p1977_p4 = scmp.ne.s32.totalorder %s2763_s21, %s1976_s8  ;;  %p1981_p9 = scmp.lt.u32.totalorder %s2763_s21, %s2812_s7 }
 0x7fd   : > { %p1982_p10 = scmp.lt.u32.totalorder %s1980_s14, %s1976_s8  ;;  %p1984_p12 = scmp.lt.u32.totalorder %s1976_s8, %s2763_s21 }
 0x7fe   : > { %p1978_p7 = pnand %p1977_p4, %p2108_p5 }
 0x7ff   : > { %p1983_p11 = por %p1982_p10, %p1981_p9 }
 0x800   : > { %p1979_p8 = pneg %p1978_p7 }
 0x801   : > { %p1985_p13 = por %p1984_p12, %p1983_p11 }
 0x803   : > { %p1986_p0 = pnand %p1985_p13, %p1979_p8 }
 0x805   : > { %1989 = shalt.err (!%p1986_p0)
}
 0x806   : > { %1722 = dma.vmem_to_hbm [thread:$0]  (%p2108_p5), %s2765_s18, 128, %s2763_s21, %s1524_s22  }
 0x807 PF: > { %p1728_p1 = scmp.ge.s32.totalorder %s2024_s27, 2  ;;  %s1550_s19 = sand.u32 1, %s2012_s24  }
 0x808   : > { %s1551_s20 = scalar_lea.sflag [#allocation3], %s1550_s19 }
 0x809   : > { %p1725_p2 = pnand %p1728_p1, %p2112_p6 }
 0x80b   : > { %2007 = dma.done.wait (!%p1725_p2), %s1551_s20, 128  }
 0x80c   : > { %2009 = vsyncadd (!%p1725_p2), %s1551_s20, 4294967168  ;;  %p17_p3 = scmp.ge.s32.totalorder %s2095_s30, 4   ;;  %s2899_s24 = smov %s2016_s25 }
 0x80d   : > { %s2900_s25 = smov %s2020_s26  ;;  %s2901_s26 = smov %s2106_s10 }
 0x80e   : > { %s2902_s27 = smov %s2095_s30  ;;  %19 = sbr.rel (!%p17_p3) target bundleno = 3 (0x3), region = 83 }
 0x815   :  { %1556 = vsyncpa [#allocation3], 1 }
 0x816   :  { %1558 = vsyncpa [#allocation3 + $0x1], 1 }

</bundles_post_ra>
